<compile_context>
chip_gen: v5e
topology: v5e:2x2
jax: 0.10.0
libtpu: 0.0.40
codegen_flags: <defaults>
</compile_context>

<pallas_src>
import functools

import jax
import jax.numpy as jnp
from jax.experimental import pallas as pl
from jax.experimental.pallas import tpu as pltpu


# ----------------------------------------------------------------------------
# Fused SEBlock kernel (Nb batch samples per grid step).
#   x_ref:    (Nb, Cin, HW)  input block, channels on sublanes, spatial on lanes
#   w1_ref:   (C0, Cin)      bf16 conv1 weight, bn1 scale folded
#   b1_ref:   (C0, 1)        f32 bn1 bias
#   w2_ref:   (C1, 9*C0)     bf16 conv2 weight, taps flattened into K, bn2 folded
#   b2_ref:   (C1, 1)        f32 bn2 bias
#   w3_ref:   (C2, C1)       bf16 conv3 weight, bn3 scale folded
#   b3_ref:   (C2, 1)        f32 bn3 bias
#   sw1_ref:  (C2, Cr)       SE reduce weight (transposed), f32 (VPU path)
#   sb1_ref:  (1, Cr)        SE reduce bias
#   sw2_ref:  (C2, Cr)       SE expand weight
#   sb2_ref:  (C2, 1)        SE expand bias
#   o_ref:    (Nb, C2, HW)
# ----------------------------------------------------------------------------
def _se_block_kernel(x_ref, w1_ref, b1_ref, w2_ref, b2_ref,
                     w3_ref, b3_ref, sw1_ref, sb1_ref, sw2_ref, sb2_ref,
                     o_ref, *, W):
    f32 = jnp.float32
    bf16 = jnp.bfloat16
    Nb, Cin, HW = x_ref.shape
    NHW = Nb * HW
    PAD = W + 1

    # --- conv1 (1x1, bn1 folded) + relu: all Nb samples in one lane-wide dot --
    x_wide = jnp.concatenate([x_ref[i] for i in range(Nb)], axis=1)  # (Cin, Nb*HW)
    out1 = jnp.dot(w1_ref[...], x_wide.astype(bf16),
                   preferred_element_type=f32) + b1_ref[...]
    out1 = jnp.maximum(out1, 0.0)                                    # (C0, Nb*HW) f32
    C0 = out1.shape[0]

    # --- conv2 (3x3, pad=1, bn2 folded) + relu: ONE fused K=9*C0 contraction --
    # Per-sample zero-padded lane buffers (pad width W+1 absorbs the dy=+-1 row
    # spill); only dx=+-1 taps need a column mask, generated in-kernel.
    col = jax.lax.broadcasted_iota(jnp.int32, (1, NHW), 1) % W
    mask_l = (col >= 1).astype(f32)         # valid source column for dx = -1
    mask_r = (col < W - 1).astype(f32)      # valid source column for dx = +1
    zpad = jnp.zeros((C0, PAD), f32)
    padded = [jnp.concatenate([zpad, out1[:, i * HW:(i + 1) * HW], zpad], axis=1)
              for i in range(Nb)]           # each (C0, HW + 2*(W+1))
    taps = []
    for k in range(9):
        dy, dx = k // 3 - 1, k % 3 - 1
        off = dy * W + dx
        sh = jnp.concatenate(
            [p[:, PAD + off: PAD + off + HW] for p in padded], axis=1)
        if dx == -1:
            sh = sh * mask_l
        elif dx == 1:
            sh = sh * mask_r
        taps.append(sh)
    stacked = jnp.concatenate(taps, axis=0).astype(bf16)             # (9*C0, Nb*HW)
    out2 = jnp.dot(w2_ref[...], stacked, preferred_element_type=f32) + b2_ref[...]
    out2 = jnp.maximum(out2, 0.0)                                    # (C1, Nb*HW)

    # --- conv3 (1x1, bn3 folded), no relu ------------------------------------
    out3 = jnp.dot(w3_ref[...], out2.astype(bf16),
                   preferred_element_type=f32) + b3_ref[...]         # (C2, Nb*HW)

    # --- SE branch + rescale + residual + final relu, per sample -------------
    # Tiny (Cr=C2//16) SE matmuls run on the VPU as broadcast-mul + reduce.
    for i in range(Nb):
        o3 = out3[:, i * HW:(i + 1) * HW]                            # (C2, HW)
        pooled = jnp.mean(o3, axis=1, keepdims=True)                 # (C2, 1)
        h = jnp.sum(sw1_ref[...] * pooled, axis=0, keepdims=True) + sb1_ref[...]
        h = jnp.maximum(h, 0.0)                                      # (1, Cr)
        z = jnp.sum(sw2_ref[...] * h, axis=1, keepdims=True) + sb2_ref[...]
        s = 1.0 / (1.0 + jnp.exp(-z))                                # exact sigmoid
        out = jnp.maximum(o3 * s + x_ref[i], 0.0)                    # (C2, HW)
        o_ref[i] = out.astype(o_ref.dtype)


# ----------------------------------------------------------------------------
# Wrapper: NCHW in / NCHW out with zero transposes (only free reshapes).
# ----------------------------------------------------------------------------
def se_block_forward(x_nchw, p, nb=2):
    N, Cin, H, W = x_nchw.shape
    HW = H * W
    C2 = p["w3f"].shape[0]
    # Identity residual requires filters[2] == in_channels (module default path).
    assert Cin == C2, "identity residual requires filters[2] == in_channels"
    # TODO(synk): stride>1 / down_sample residual path not implemented.
    nb = min(nb, N)
    assert N % nb == 0, "batch must be divisible by samples-per-grid-step"
    x3 = x_nchw.reshape(N, Cin, HW)

    kernel = functools.partial(_se_block_kernel, W=W)

    def full2d(a):
        return pl.BlockSpec(a.shape, lambda n: (0, 0))

    out = pl.pallas_call(
        kernel,
        out_shape=jax.ShapeDtypeStruct((N, C2, HW), jnp.float32),
        grid=(N // nb,),
        in_specs=[
            pl.BlockSpec((nb, Cin, HW), lambda n: (n, 0, 0)),
            full2d(p["w1f"]), full2d(p["b1"]),
            full2d(p["w2flat"]), full2d(p["b2"]),
            full2d(p["w3f"]), full2d(p["b3"]),
            full2d(p["sw1"]), full2d(p["sb1"]),
            full2d(p["sw2"]), full2d(p["sb2"]),
        ],
        out_specs=pl.BlockSpec((nb, C2, HW), lambda n: (n, 0, 0)),
        compiler_params=pltpu.CompilerParams(
            dimension_semantics=("parallel",)),
    )(x3, p["w1f"], p["b1"], p["w2flat"], p["b2"], p["w3f"], p["b3"],
      p["sw1"], p["sb1"], p["sw2"], p["sb2"])
    return out.reshape(N, C2, H, W)


# ----------------------------------------------------------------------------
# Host-side parameter preparation
# ----------------------------------------------------------------------------
def fold_bn(gamma, beta, mean, var, eps=1e-5):
    scale = gamma / jnp.sqrt(var + eps)
    bias = beta - mean * scale
    return scale, bias


def build_params(w1_t, w2_t, w3_t, se_w1_t, se_b1, se_w2_t, se_b2,
                 bn1_scale, bn1_bias, bn2_scale, bn2_bias,
                 bn3_scale, bn3_bias):
    bf16 = jnp.bfloat16
    C1, C0 = w2_t.shape[0], w2_t.shape[1]
    # BN scales folded into weights (per output channel); only bias stays.
    w1f = (w1_t[:, :, 0, 0] * bn1_scale[:, None]).astype(bf16)        # (C0, Cin)
    # conv2 weights flattened as (C1, 9*C0): column k*C0+i == tap k, channel i,
    # matching the stacked operand order built in the kernel (k = ky*3+kx).
    w2flat = (jnp.transpose(w2_t, (0, 2, 3, 1)).reshape(C1, 9 * C0)
              * bn2_scale[:, None]).astype(bf16)                      # (C1, 9*C0)
    w3f = (w3_t[:, :, 0, 0] * bn3_scale[:, None]).astype(bf16)        # (C2, C1)
    return dict(
        w1f=w1f, b1=bn1_bias[:, None],
        w2flat=w2flat, b2=bn2_bias[:, None],
        w3f=w3f, b3=bn3_bias[:, None],
        sw1=se_w1_t[:, :, 0, 0].T,       # (C2, Cr)  f32 (VPU path)
        sb1=se_b1[None, :],              # (1, Cr)
        sw2=se_w2_t[:, :, 0, 0],         # (C2, Cr)
        sb2=se_b2[:, None],              # (C2, 1)
    )


# ----------------------------------------------------------------------------
# Pure-JAX reference (independent formulation via lax.conv) for validation
# ----------------------------------------------------------------------------
def reference_forward(x_nchw, rp):
    x = jnp.transpose(x_nchw, (0, 2, 3, 1))

    def conv(inp, w_torch, padding):
        w = jnp.transpose(w_torch, (2, 3, 1, 0))                  # OIHW -> HWIO
        return jax.lax.conv_general_dilated(
            inp, w, (1, 1), padding,
            dimension_numbers=("NHWC", "HWIO", "NHWC"))

    def bn(v, scale, bias):
        return v * scale.reshape(1, 1, 1, -1) + bias.reshape(1, 1, 1, -1)

    out = jnp.maximum(bn(conv(x, rp["w1_t"], "VALID"), rp["bn1_scale"], rp["bn1_bias"]), 0.0)
    out = jnp.maximum(bn(conv(out, rp["w2_t"], "SAME"), rp["bn2_scale"], rp["bn2_bias"]), 0.0)
    out = bn(conv(out, rp["w3_t"], "VALID"), rp["bn3_scale"], rp["bn3_bias"])

    pooled = jnp.mean(out, axis=(1, 2))                           # (N, C2)
    h = jnp.maximum(pooled @ rp["se_w1_2d"].T + rp["se_b1"], 0.0)
    s = jax.nn.sigmoid(h @ rp["se_w2_2d"].T + rp["se_b2"])
    out = out * s[:, None, None, :] + x
    out = jnp.maximum(out, 0.0)
    return jnp.transpose(out, (0, 3, 1, 2))


# ----------------------------------------------------------------------------
# Deterministic parameter construction + run
# ----------------------------------------------------------------------------
if __name__ == "__main__":
    key = jax.random.PRNGKey(0)
    N, H, W = 4, 16, 16                    # HW = 256 -> lane-dense blocks
    Cin = 32
    filters = (16, 16, 32)                 # filters[2] == Cin -> identity residual
    C0, C1, C2 = filters
    Cr = C2 // 16

    ks = jax.random.split(key, 20)
    f32 = jnp.float32

    # Conv weights in PyTorch OIHW layout (no bias, as in the module).
    w1_t = 0.1 * jax.random.normal(ks[0], (C0, Cin, 1, 1), f32)
    w2_t = 0.1 * jax.random.normal(ks[1], (C1, C0, 3, 3), f32)
    w3_t = 0.1 * jax.random.normal(ks[2], (C2, C1, 1, 1), f32)
    # SE 1x1 convs (with bias).
    se_w1_t = 0.1 * jax.random.normal(ks[3], (Cr, C2, 1, 1), f32)
    se_b1 = 0.1 * jax.random.normal(ks[4], (Cr,), f32)
    se_w2_t = 0.1 * jax.random.normal(ks[5], (C2, Cr, 1, 1), f32)
    se_b2 = 0.1 * jax.random.normal(ks[6], (C2,), f32)

    def bn_params(kg, kb, km, kv, c):
        gamma = 1.0 + 0.1 * jax.random.normal(kg, (c,), f32)
        beta = 0.1 * jax.random.normal(kb, (c,), f32)
        mean = 0.1 * jax.random.normal(km, (c,), f32)
        var = jax.random.uniform(kv, (c,), f32, 0.5, 1.5)
        return fold_bn(gamma, beta, mean, var)

    bn1_scale, bn1_bias = bn_params(ks[7], ks[8], ks[9], ks[10], C0)
    bn2_scale, bn2_bias = bn_params(ks[11], ks[12], ks[13], ks[14], C1)
    bn3_scale, bn3_bias = bn_params(ks[15], ks[16], ks[17], ks[18], C2)

    params = build_params(w1_t, w2_t, w3_t, se_w1_t, se_b1, se_w2_t, se_b2,
                          bn1_scale, bn1_bias, bn2_scale, bn2_bias,
                          bn3_scale, bn3_bias)

    x = jax.random.normal(ks[19], (N, Cin, H, W), f32)            # NCHW input

    out = se_block_forward(x, params, nb=2)                       # 2 grid steps
    out = jax.block_until_ready(out)

    ref_p = dict(w1_t=w1_t, w2_t=w2_t, w3_t=w3_t,
                 bn1_scale=bn1_scale, bn1_bias=bn1_bias,
                 bn2_scale=bn2_scale, bn2_bias=bn2_bias,
                 bn3_scale=bn3_scale, bn3_bias=bn3_bias,
                 se_w1_2d=se_w1_t[:, :, 0, 0], se_b1=se_b1,
                 se_w2_2d=se_w2_t[:, :, 0, 0], se_b2=se_b2)
    ref = reference_forward(x, ref_p)

    max_err = float(jnp.max(jnp.abs(out - ref)))
    assert out.shape == (N, C2, H, W)
    # Sigmoid is exact now; tolerance covers bf16 MXU operand/weight rounding
    # through three chained convolutions (f32 reference, f32 accumulation).
    assert max_err < 3e-2, f"mismatch vs reference: max_err={max_err}"

    print("KERNEL_OK")
</pallas_src>

<mosaic_0001>
module attributes {stable_mosaic.version = 11 : i64} {
  func.func @_se_block_kernel(%arg0: i32, %arg1: memref<2x32x256xf32, #tpu.memory_space<vmem>>, %arg2: memref<16x32xbf16, #tpu.memory_space<vmem>>, %arg3: memref<16x1xf32, #tpu.memory_space<vmem>>, %arg4: memref<16x144xbf16, #tpu.memory_space<vmem>>, %arg5: memref<16x1xf32, #tpu.memory_space<vmem>>, %arg6: memref<32x16xbf16, #tpu.memory_space<vmem>>, %arg7: memref<32x1xf32, #tpu.memory_space<vmem>>, %arg8: memref<32x2xf32, #tpu.memory_space<vmem>>, %arg9: memref<1x2xf32, #tpu.memory_space<vmem>>, %arg10: memref<32x2xf32, #tpu.memory_space<vmem>>, %arg11: memref<32x1xf32, #tpu.memory_space<vmem>>, %arg12: memref<2x32x256xf32, #tpu.memory_space<vmem>>) attributes {dimension_semantics = [#tpu.dimension_semantics<parallel>], iteration_bounds = array<i64: 2>, scalar_prefetch = 0 : i64, scratch_operands = 0 : i64, tpu.core_type = #tpu.core_type<tc>, window_params = [{transform_indices = @transform_0, window_bounds = array<i64: 2, 32, 256>}, {pipeline_mode = #tpu.pipeline_mode<synchronous>, transform_indices = @transform_1, window_bounds = array<i64: 16, 32>}, {pipeline_mode = #tpu.pipeline_mode<synchronous>, transform_indices = @transform_2, window_bounds = array<i64: 16, 1>}, {pipeline_mode = #tpu.pipeline_mode<synchronous>, transform_indices = @transform_3, window_bounds = array<i64: 16, 144>}, {pipeline_mode = #tpu.pipeline_mode<synchronous>, transform_indices = @transform_4, window_bounds = array<i64: 16, 1>}, {pipeline_mode = #tpu.pipeline_mode<synchronous>, transform_indices = @transform_5, window_bounds = array<i64: 32, 16>}, {pipeline_mode = #tpu.pipeline_mode<synchronous>, transform_indices = @transform_6, window_bounds = array<i64: 32, 1>}, {pipeline_mode = #tpu.pipeline_mode<synchronous>, transform_indices = @transform_7, window_bounds = array<i64: 32, 2>}, {pipeline_mode = #tpu.pipeline_mode<synchronous>, transform_indices = @transform_8, window_bounds = array<i64: 1, 2>}, {pipeline_mode = #tpu.pipeline_mode<synchronous>, transform_indices = @transform_9, window_bounds = array<i64: 32, 2>}, {pipeline_mode = #tpu.pipeline_mode<synchronous>, transform_indices = @transform_10, window_bounds = array<i64: 32, 1>}, {transform_indices = @transform_11, window_bounds = array<i64: 2, 32, 256>}]} {
    %c0 = arith.constant 0 : index
    %c0_0 = arith.constant 0 : index
    %c0_1 = arith.constant 0 : index
    %0 = vector.load %arg1[%c0, %c0_0, %c0_1] : memref<2x32x256xf32, #tpu.memory_space<vmem>>, vector<1x32x256xf32>
    %1 = vector.shape_cast %0 : vector<1x32x256xf32> to vector<32x256xf32>
    %c1 = arith.constant 1 : index
    %c0_2 = arith.constant 0 : index
    %c0_3 = arith.constant 0 : index
    %2 = vector.load %arg1[%c1, %c0_2, %c0_3] : memref<2x32x256xf32, #tpu.memory_space<vmem>>, vector<1x32x256xf32>
    %3 = vector.shape_cast %2 : vector<1x32x256xf32> to vector<32x256xf32>
    %4 = tpu.concatenate %1, %3 in 1 : vector<32x256xf32>, vector<32x256xf32> -> vector<32x512xf32>
    %c0_4 = arith.constant 0 : index
    %c0_5 = arith.constant 0 : index
    %5 = vector.load %arg2[%c0_4, %c0_5] : memref<16x32xbf16, #tpu.memory_space<vmem>>, vector<16x32xbf16>
    %6 = arith.truncf %4 : vector<32x512xf32> to vector<32x512xbf16>
    %cst = arith.constant dense<0.000000e+00> : vector<16x512xf32>
    %7 = tpu.matmul %5, %6, %cst {dimension_numbers = #tpu.dot_dimension_numbers<[1], [0], [0], [1], [0, 0, 1, 1], [], []>} : vector<16x32xbf16>, vector<32x512xbf16>, vector<16x512xf32> -> vector<16x512xf32>
    %c0_6 = arith.constant 0 : index
    %c0_7 = arith.constant 0 : index
    %8 = vector.load %arg3[%c0_6, %c0_7] : memref<16x1xf32, #tpu.memory_space<vmem>>, vector<16x1xf32>
    %9 = vector.broadcast %8 : vector<16x1xf32> to vector<16x512xf32>
    %10 = arith.addf %7, %9 : vector<16x512xf32>
    %cst_8 = arith.constant 0.000000e+00 : f32
    %11 = vector.broadcast %cst_8 : f32 to vector<16x512xf32>
    %12 = arith.maximumf %10, %11 : vector<16x512xf32>
    %13 = tpu.iota {dimensions = array<i32: 1>} : vector<1x512xi32>
    %c16_i32 = arith.constant 16 : i32
    %c0_i32 = arith.constant 0 : i32
    %14 = arith.cmpi eq, %c16_i32, %c0_i32 : i32
    %c1_i32 = arith.constant 1 : i32
    %15 = arith.select %14, %c1_i32, %c16_i32 : i32
    %16 = vector.broadcast %15 : i32 to vector<1x512xi32>
    %17 = arith.remsi %13, %16 : vector<1x512xi32>
    %c0_i32_9 = arith.constant 0 : i32
    %18 = vector.broadcast %c0_i32_9 : i32 to vector<1x512xi32>
    %19 = arith.cmpi ne, %17, %18 : vector<1x512xi32>
    %c0_i32_10 = arith.constant 0 : i32
    %20 = vector.broadcast %c0_i32_10 : i32 to vector<1x512xi32>
    %21 = arith.cmpi slt, %17, %20 : vector<1x512xi32>
    %c0_i32_11 = arith.constant 0 : i32
    %22 = arith.cmpi slt, %15, %c0_i32_11 : i32
    %23 = vector.broadcast %22 : i1 to vector<1x512xi1>
    %24 = vector.broadcast %23 : vector<1x512xi1> to vector<1x512xi1>
    %25 = arith.xori %21, %24 : vector<1x512xi1>
    %26 = arith.andi %25, %19 : vector<1x512xi1>
    %27 = vector.broadcast %15 : i32 to vector<1x512xi32>
    %28 = arith.addi %17, %27 : vector<1x512xi32>
    %29 = arith.select %26, %28, %17 : vector<1x512xi1>, vector<1x512xi32>
    %c1_i32_12 = arith.constant 1 : i32
    %30 = vector.broadcast %c1_i32_12 : i32 to vector<1x512xi32>
    %31 = arith.cmpi sge, %29, %30 : vector<1x512xi32>
    %32 = arith.extui %31 : vector<1x512xi1> to vector<1x512xi32>
    %33 = arith.sitofp %32 : vector<1x512xi32> to vector<1x512xf32>
    %c15_i32 = arith.constant 15 : i32
    %34 = vector.broadcast %c15_i32 : i32 to vector<1x512xi32>
    %35 = arith.cmpi slt, %29, %34 : vector<1x512xi32>
    %36 = arith.extui %35 : vector<1x512xi1> to vector<1x512xi32>
    %37 = arith.sitofp %36 : vector<1x512xi32> to vector<1x512xf32>
    %cst_13 = arith.constant 0.000000e+00 : f32
    %38 = vector.broadcast %cst_13 : f32 to vector<16x17xf32>
    %39 = vector.extract_strided_slice %12 {offsets = [0, 0], sizes = [16, 256], strides = [1, 1]} : vector<16x512xf32> to vector<16x256xf32>
    %40 = tpu.concatenate %38, %39, %38 in 1 : vector<16x17xf32>, vector<16x256xf32>, vector<16x17xf32> -> vector<16x290xf32>
    %41 = vector.extract_strided_slice %12 {offsets = [0, 256], sizes = [16, 256], strides = [1, 1]} : vector<16x512xf32> to vector<16x256xf32>
    %42 = tpu.concatenate %38, %41, %38 in 1 : vector<16x17xf32>, vector<16x256xf32>, vector<16x17xf32> -> vector<16x290xf32>
    %43 = vector.extract_strided_slice %40 {offsets = [0, 0], sizes = [16, 256], strides = [1, 1]} : vector<16x290xf32> to vector<16x256xf32>
    %44 = vector.extract_strided_slice %42 {offsets = [0, 0], sizes = [16, 256], strides = [1, 1]} : vector<16x290xf32> to vector<16x256xf32>
    %45 = tpu.concatenate %43, %44 in 1 : vector<16x256xf32>, vector<16x256xf32> -> vector<16x512xf32>
    %46 = vector.broadcast %33 : vector<1x512xf32> to vector<16x512xf32>
    %47 = arith.mulf %45, %46 : vector<16x512xf32>
    %48 = vector.extract_strided_slice %40 {offsets = [0, 1], sizes = [16, 256], strides = [1, 1]} : vector<16x290xf32> to vector<16x256xf32>
    %49 = vector.extract_strided_slice %42 {offsets = [0, 1], sizes = [16, 256], strides = [1, 1]} : vector<16x290xf32> to vector<16x256xf32>
    %50 = tpu.concatenate %48, %49 in 1 : vector<16x256xf32>, vector<16x256xf32> -> vector<16x512xf32>
    %51 = vector.extract_strided_slice %40 {offsets = [0, 2], sizes = [16, 256], strides = [1, 1]} : vector<16x290xf32> to vector<16x256xf32>
    %52 = vector.extract_strided_slice %42 {offsets = [0, 2], sizes = [16, 256], strides = [1, 1]} : vector<16x290xf32> to vector<16x256xf32>
    %53 = tpu.concatenate %51, %52 in 1 : vector<16x256xf32>, vector<16x256xf32> -> vector<16x512xf32>
    %54 = vector.broadcast %37 : vector<1x512xf32> to vector<16x512xf32>
    %55 = arith.mulf %53, %54 : vector<16x512xf32>
    %56 = vector.extract_strided_slice %40 {offsets = [0, 16], sizes = [16, 256], strides = [1, 1]} : vector<16x290xf32> to vector<16x256xf32>
    %57 = vector.extract_strided_slice %42 {offsets = [0, 16], sizes = [16, 256], strides = [1, 1]} : vector<16x290xf32> to vector<16x256xf32>
    %58 = tpu.concatenate %56, %57 in 1 : vector<16x256xf32>, vector<16x256xf32> -> vector<16x512xf32>
    %59 = vector.broadcast %33 : vector<1x512xf32> to vector<16x512xf32>
    %60 = arith.mulf %58, %59 : vector<16x512xf32>
    %61 = vector.extract_strided_slice %40 {offsets = [0, 17], sizes = [16, 256], strides = [1, 1]} : vector<16x290xf32> to vector<16x256xf32>
    %62 = vector.extract_strided_slice %42 {offsets = [0, 17], sizes = [16, 256], strides = [1, 1]} : vector<16x290xf32> to vector<16x256xf32>
    %63 = tpu.concatenate %61, %62 in 1 : vector<16x256xf32>, vector<16x256xf32> -> vector<16x512xf32>
    %64 = vector.extract_strided_slice %40 {offsets = [0, 18], sizes = [16, 256], strides = [1, 1]} : vector<16x290xf32> to vector<16x256xf32>
    %65 = vector.extract_strided_slice %42 {offsets = [0, 18], sizes = [16, 256], strides = [1, 1]} : vector<16x290xf32> to vector<16x256xf32>
    %66 = tpu.concatenate %64, %65 in 1 : vector<16x256xf32>, vector<16x256xf32> -> vector<16x512xf32>
    %67 = vector.broadcast %37 : vector<1x512xf32> to vector<16x512xf32>
    %68 = arith.mulf %66, %67 : vector<16x512xf32>
    %69 = vector.extract_strided_slice %40 {offsets = [0, 32], sizes = [16, 256], strides = [1, 1]} : vector<16x290xf32> to vector<16x256xf32>
    %70 = vector.extract_strided_slice %42 {offsets = [0, 32], sizes = [16, 256], strides = [1, 1]} : vector<16x290xf32> to vector<16x256xf32>
    %71 = tpu.concatenate %69, %70 in 1 : vector<16x256xf32>, vector<16x256xf32> -> vector<16x512xf32>
    %72 = vector.broadcast %33 : vector<1x512xf32> to vector<16x512xf32>
    %73 = arith.mulf %71, %72 : vector<16x512xf32>
    %74 = vector.extract_strided_slice %40 {offsets = [0, 33], sizes = [16, 256], strides = [1, 1]} : vector<16x290xf32> to vector<16x256xf32>
    %75 = vector.extract_strided_slice %42 {offsets = [0, 33], sizes = [16, 256], strides = [1, 1]} : vector<16x290xf32> to vector<16x256xf32>
    %76 = tpu.concatenate %74, %75 in 1 : vector<16x256xf32>, vector<16x256xf32> -> vector<16x512xf32>
    %77 = vector.extract_strided_slice %40 {offsets = [0, 34], sizes = [16, 256], strides = [1, 1]} : vector<16x290xf32> to vector<16x256xf32>
    %78 = vector.extract_strided_slice %42 {offsets = [0, 34], sizes = [16, 256], strides = [1, 1]} : vector<16x290xf32> to vector<16x256xf32>
    %79 = tpu.concatenate %77, %78 in 1 : vector<16x256xf32>, vector<16x256xf32> -> vector<16x512xf32>
    %80 = vector.broadcast %37 : vector<1x512xf32> to vector<16x512xf32>
    %81 = arith.mulf %79, %80 : vector<16x512xf32>
    %82 = tpu.concatenate %47, %50, %55, %60, %63, %68, %73, %76, %81 in 0 : vector<16x512xf32>, vector<16x512xf32>, vector<16x512xf32>, vector<16x512xf32>, vector<16x512xf32>, vector<16x512xf32>, vector<16x512xf32>, vector<16x512xf32>, vector<16x512xf32> -> vector<144x512xf32>
    %83 = arith.truncf %82 : vector<144x512xf32> to vector<144x512xbf16>
    %c0_14 = arith.constant 0 : index
    %c0_15 = arith.constant 0 : index
    %84 = vector.load %arg4[%c0_14, %c0_15] : memref<16x144xbf16, #tpu.memory_space<vmem>>, vector<16x144xbf16>
    %cst_16 = arith.constant dense<0.000000e+00> : vector<16x512xf32>
    %85 = tpu.matmul %84, %83, %cst_16 {dimension_numbers = #tpu.dot_dimension_numbers<[1], [0], [0], [1], [0, 0, 1, 1], [], []>} : vector<16x144xbf16>, vector<144x512xbf16>, vector<16x512xf32> -> vector<16x512xf32>
    %c0_17 = arith.constant 0 : index
    %c0_18 = arith.constant 0 : index
    %86 = vector.load %arg5[%c0_17, %c0_18] : memref<16x1xf32, #tpu.memory_space<vmem>>, vector<16x1xf32>
    %87 = vector.broadcast %86 : vector<16x1xf32> to vector<16x512xf32>
    %88 = arith.addf %85, %87 : vector<16x512xf32>
    %cst_19 = arith.constant 0.000000e+00 : f32
    %89 = vector.broadcast %cst_19 : f32 to vector<16x512xf32>
    %90 = arith.maximumf %88, %89 : vector<16x512xf32>
    %c0_20 = arith.constant 0 : index
    %c0_21 = arith.constant 0 : index
    %91 = vector.load %arg6[%c0_20, %c0_21] : memref<32x16xbf16, #tpu.memory_space<vmem>>, vector<32x16xbf16>
    %92 = arith.truncf %90 : vector<16x512xf32> to vector<16x512xbf16>
    %cst_22 = arith.constant dense<0.000000e+00> : vector<32x512xf32>
    %93 = tpu.matmul %91, %92, %cst_22 {dimension_numbers = #tpu.dot_dimension_numbers<[1], [0], [0], [1], [0, 0, 1, 1], [], []>} : vector<32x16xbf16>, vector<16x512xbf16>, vector<32x512xf32> -> vector<32x512xf32>
    %c0_23 = arith.constant 0 : index
    %c0_24 = arith.constant 0 : index
    %94 = vector.load %arg7[%c0_23, %c0_24] : memref<32x1xf32, #tpu.memory_space<vmem>>, vector<32x1xf32>
    %95 = vector.broadcast %94 : vector<32x1xf32> to vector<32x512xf32>
    %96 = arith.addf %93, %95 : vector<32x512xf32>
    %97 = vector.extract_strided_slice %96 {offsets = [0, 0], sizes = [32, 256], strides = [1, 1]} : vector<32x512xf32> to vector<32x256xf32>
    %cst_25 = arith.constant dense<0.000000e+00> : vector<32xf32>
    %98 = vector.multi_reduction <add>, %97, %cst_25 [1] : vector<32x256xf32> to vector<32xf32>
    %99 = vector.shape_cast %98 : vector<32xf32> to vector<32x1xf32>
    %cst_26 = arith.constant 2.560000e+02 : f32
    %100 = vector.broadcast %cst_26 : f32 to vector<32x1xf32>
    %101 = arith.divf %99, %100 : vector<32x1xf32>
    %c0_27 = arith.constant 0 : index
    %c0_28 = arith.constant 0 : index
    %102 = vector.load %arg8[%c0_27, %c0_28] : memref<32x2xf32, #tpu.memory_space<vmem>>, vector<32x2xf32>
    %103 = vector.broadcast %101 : vector<32x1xf32> to vector<32x2xf32>
    %104 = arith.mulf %102, %103 : vector<32x2xf32>
    %cst_29 = arith.constant dense<0.000000e+00> : vector<2xf32>
    %105 = vector.multi_reduction <add>, %104, %cst_29 [0] : vector<32x2xf32> to vector<2xf32>
    %106 = vector.shape_cast %105 : vector<2xf32> to vector<1x2xf32>
    %c0_30 = arith.constant 0 : index
    %c0_31 = arith.constant 0 : index
    %107 = vector.load %arg9[%c0_30, %c0_31] : memref<1x2xf32, #tpu.memory_space<vmem>>, vector<1x2xf32>
    %108 = arith.addf %106, %107 : vector<1x2xf32>
    %cst_32 = arith.constant 0.000000e+00 : f32
    %109 = vector.broadcast %cst_32 : f32 to vector<1x2xf32>
    %110 = arith.maximumf %108, %109 : vector<1x2xf32>
    %c0_33 = arith.constant 0 : index
    %c0_34 = arith.constant 0 : index
    %111 = vector.load %arg10[%c0_33, %c0_34] : memref<32x2xf32, #tpu.memory_space<vmem>>, vector<32x2xf32>
    %112 = vector.broadcast %110 : vector<1x2xf32> to vector<32x2xf32>
    %113 = arith.mulf %111, %112 : vector<32x2xf32>
    %cst_35 = arith.constant dense<0.000000e+00> : vector<32xf32>
    %114 = vector.multi_reduction <add>, %113, %cst_35 [1] : vector<32x2xf32> to vector<32xf32>
    %115 = vector.shape_cast %114 : vector<32xf32> to vector<32x1xf32>
    %c0_36 = arith.constant 0 : index
    %c0_37 = arith.constant 0 : index
    %116 = vector.load %arg11[%c0_36, %c0_37] : memref<32x1xf32, #tpu.memory_space<vmem>>, vector<32x1xf32>
    %117 = arith.addf %115, %116 : vector<32x1xf32>
    %cst_38 = arith.constant 0.000000e+00 : f32
    %118 = vector.broadcast %cst_38 : f32 to vector<32x1xf32>
    %119 = arith.subf %118, %117 : vector<32x1xf32>
    %120 = math.exp %119 : vector<32x1xf32>
    %cst_39 = arith.constant 1.000000e+00 : f32
    %121 = vector.broadcast %cst_39 : f32 to vector<32x1xf32>
    %122 = arith.addf %121, %120 : vector<32x1xf32>
    %cst_40 = arith.constant 1.000000e+00 : f32
    %123 = vector.broadcast %cst_40 : f32 to vector<32x1xf32>
    %124 = arith.divf %123, %122 : vector<32x1xf32>
    %125 = vector.broadcast %124 : vector<32x1xf32> to vector<32x256xf32>
    %126 = arith.mulf %97, %125 : vector<32x256xf32>
    %c0_41 = arith.constant 0 : index
    %c0_42 = arith.constant 0 : index
    %c0_43 = arith.constant 0 : index
    %127 = vector.load %arg1[%c0_41, %c0_42, %c0_43] : memref<2x32x256xf32, #tpu.memory_space<vmem>>, vector<1x32x256xf32>
    %128 = vector.shape_cast %127 : vector<1x32x256xf32> to vector<32x256xf32>
    %129 = arith.addf %126, %128 : vector<32x256xf32>
    %cst_44 = arith.constant 0.000000e+00 : f32
    %130 = vector.broadcast %cst_44 : f32 to vector<32x256xf32>
    %131 = arith.maximumf %129, %130 : vector<32x256xf32>
    %c0_45 = arith.constant 0 : index
    %c0_46 = arith.constant 0 : index
    %c0_47 = arith.constant 0 : index
    %132 = vector.load %arg12[%c0_45, %c0_46, %c0_47] : memref<2x32x256xf32, #tpu.memory_space<vmem>>, vector<1x32x256xf32>
    %133 = vector.shape_cast %132 : vector<1x32x256xf32> to vector<32x256xf32>
    %134 = vector.shape_cast %131 : vector<32x256xf32> to vector<1x32x256xf32>
    tpu.vector_store %arg12[%c0_45, %c0_46, %c0_47], %134 {strides = array<i32>} : memref<2x32x256xf32, #tpu.memory_space<vmem>>, vector<1x32x256xf32>,
    %135 = vector.extract_strided_slice %96 {offsets = [0, 256], sizes = [32, 256], strides = [1, 1]} : vector<32x512xf32> to vector<32x256xf32>
    %cst_48 = arith.constant dense<0.000000e+00> : vector<32xf32>
    %136 = vector.multi_reduction <add>, %135, %cst_48 [1] : vector<32x256xf32> to vector<32xf32>
    %137 = vector.shape_cast %136 : vector<32xf32> to vector<32x1xf32>
    %cst_49 = arith.constant 2.560000e+02 : f32
    %138 = vector.broadcast %cst_49 : f32 to vector<32x1xf32>
    %139 = arith.divf %137, %138 : vector<32x1xf32>
    %c0_50 = arith.constant 0 : index
    %c0_51 = arith.constant 0 : index
    %140 = vector.load %arg8[%c0_50, %c0_51] : memref<32x2xf32, #tpu.memory_space<vmem>>, vector<32x2xf32>
    %141 = vector.broadcast %139 : vector<32x1xf32> to vector<32x2xf32>
    %142 = arith.mulf %140, %141 : vector<32x2xf32>
    %cst_52 = arith.constant dense<0.000000e+00> : vector<2xf32>
    %143 = vector.multi_reduction <add>, %142, %cst_52 [0] : vector<32x2xf32> to vector<2xf32>
    %144 = vector.shape_cast %143 : vector<2xf32> to vector<1x2xf32>
    %c0_53 = arith.constant 0 : index
    %c0_54 = arith.constant 0 : index
    %145 = vector.load %arg9[%c0_53, %c0_54] : memref<1x2xf32, #tpu.memory_space<vmem>>, vector<1x2xf32>
    %146 = arith.addf %144, %145 : vector<1x2xf32>
    %cst_55 = arith.constant 0.000000e+00 : f32
    %147 = vector.broadcast %cst_55 : f32 to vector<1x2xf32>
    %148 = arith.maximumf %146, %147 : vector<1x2xf32>
    %c0_56 = arith.constant 0 : index
    %c0_57 = arith.constant 0 : index
    %149 = vector.load %arg10[%c0_56, %c0_57] : memref<32x2xf32, #tpu.memory_space<vmem>>, vector<32x2xf32>
    %150 = vector.broadcast %148 : vector<1x2xf32> to vector<32x2xf32>
    %151 = arith.mulf %149, %150 : vector<32x2xf32>
    %cst_58 = arith.constant dense<0.000000e+00> : vector<32xf32>
    %152 = vector.multi_reduction <add>, %151, %cst_58 [1] : vector<32x2xf32> to vector<32xf32>
    %153 = vector.shape_cast %152 : vector<32xf32> to vector<32x1xf32>
    %c0_59 = arith.constant 0 : index
    %c0_60 = arith.constant 0 : index
    %154 = vector.load %arg11[%c0_59, %c0_60] : memref<32x1xf32, #tpu.memory_space<vmem>>, vector<32x1xf32>
    %155 = arith.addf %153, %154 : vector<32x1xf32>
    %cst_61 = arith.constant 0.000000e+00 : f32
    %156 = vector.broadcast %cst_61 : f32 to vector<32x1xf32>
    %157 = arith.subf %156, %155 : vector<32x1xf32>
    %158 = math.exp %157 : vector<32x1xf32>
    %cst_62 = arith.constant 1.000000e+00 : f32
    %159 = vector.broadcast %cst_62 : f32 to vector<32x1xf32>
    %160 = arith.addf %159, %158 : vector<32x1xf32>
    %cst_63 = arith.constant 1.000000e+00 : f32
    %161 = vector.broadcast %cst_63 : f32 to vector<32x1xf32>
    %162 = arith.divf %161, %160 : vector<32x1xf32>
    %163 = vector.broadcast %162 : vector<32x1xf32> to vector<32x256xf32>
    %164 = arith.mulf %135, %163 : vector<32x256xf32>
    %c1_64 = arith.constant 1 : index
    %c0_65 = arith.constant 0 : index
    %c0_66 = arith.constant 0 : index
    %165 = vector.load %arg1[%c1_64, %c0_65, %c0_66] : memref<2x32x256xf32, #tpu.memory_space<vmem>>, vector<1x32x256xf32>
    %166 = vector.shape_cast %165 : vector<1x32x256xf32> to vector<32x256xf32>
    %167 = arith.addf %164, %166 : vector<32x256xf32>
    %cst_67 = arith.constant 0.000000e+00 : f32
    %168 = vector.broadcast %cst_67 : f32 to vector<32x256xf32>
    %169 = arith.maximumf %167, %168 : vector<32x256xf32>
    %c1_68 = arith.constant 1 : index
    %c0_69 = arith.constant 0 : index
    %c0_70 = arith.constant 0 : index
    %170 = vector.load %arg12[%c1_68, %c0_69, %c0_70] : memref<2x32x256xf32, #tpu.memory_space<vmem>>, vector<1x32x256xf32>
    %171 = vector.shape_cast %170 : vector<1x32x256xf32> to vector<32x256xf32>
    %172 = vector.shape_cast %169 : vector<32x256xf32> to vector<1x32x256xf32>
    tpu.vector_store %arg12[%c1_68, %c0_69, %c0_70], %172 {strides = array<i32>} : memref<2x32x256xf32, #tpu.memory_space<vmem>>, vector<1x32x256xf32>,
    return
  }
  func.func @transform_0(%arg0: i32) -> (i32, i32, i32) {
    %c0_i32 = arith.constant 0 : i32
    %c0_i32_0 = arith.constant 0 : i32
    %c0_i32_1 = arith.constant 0 : i32
    return %arg0, %c0_i32, %c0_i32_0 : i32, i32, i32
  }
  func.func @transform_1(%arg0: i32) -> (i32, i32) {
    %c0_i32 = arith.constant 0 : i32
    %c0_i32_0 = arith.constant 0 : i32
    %c0_i32_1 = arith.constant 0 : i32
    return %c0_i32, %c0_i32_0 : i32, i32
  }
  func.func @transform_2(%arg0: i32) -> (i32, i32) {
    %c0_i32 = arith.constant 0 : i32
    %c0_i32_0 = arith.constant 0 : i32
    %c0_i32_1 = arith.constant 0 : i32
    return %c0_i32, %c0_i32_0 : i32, i32
  }
  func.func @transform_3(%arg0: i32) -> (i32, i32) {
    %c0_i32 = arith.constant 0 : i32
    %c0_i32_0 = arith.constant 0 : i32
    %c0_i32_1 = arith.constant 0 : i32
    return %c0_i32, %c0_i32_0 : i32, i32
  }
  func.func @transform_4(%arg0: i32) -> (i32, i32) {
    %c0_i32 = arith.constant 0 : i32
    %c0_i32_0 = arith.constant 0 : i32
    %c0_i32_1 = arith.constant 0 : i32
    return %c0_i32, %c0_i32_0 : i32, i32
  }
  func.func @transform_5(%arg0: i32) -> (i32, i32) {
    %c0_i32 = arith.constant 0 : i32
    %c0_i32_0 = arith.constant 0 : i32
    %c0_i32_1 = arith.constant 0 : i32
    return %c0_i32, %c0_i32_0 : i32, i32
  }
  func.func @transform_6(%arg0: i32) -> (i32, i32) {
    %c0_i32 = arith.constant 0 : i32
    %c0_i32_0 = arith.constant 0 : i32
    %c0_i32_1 = arith.constant 0 : i32
    return %c0_i32, %c0_i32_0 : i32, i32
  }
  func.func @transform_7(%arg0: i32) -> (i32, i32) {
    %c0_i32 = arith.constant 0 : i32
    %c0_i32_0 = arith.constant 0 : i32
    %c0_i32_1 = arith.constant 0 : i32
    return %c0_i32, %c0_i32_0 : i32, i32
  }
  func.func @transform_8(%arg0: i32) -> (i32, i32) {
    %c0_i32 = arith.constant 0 : i32
    %c0_i32_0 = arith.constant 0 : i32
    %c0_i32_1 = arith.constant 0 : i32
    return %c0_i32, %c0_i32_0 : i32, i32
  }
  func.func @transform_9(%arg0: i32) -> (i32, i32) {
    %c0_i32 = arith.constant 0 : i32
    %c0_i32_0 = arith.constant 0 : i32
    %c0_i32_1 = arith.constant 0 : i32
    return %c0_i32, %c0_i32_0 : i32, i32
  }
  func.func @transform_10(%arg0: i32) -> (i32, i32) {
    %c0_i32 = arith.constant 0 : i32
    %c0_i32_0 = arith.constant 0 : i32
    %c0_i32_1 = arith.constant 0 : i32
    return %c0_i32, %c0_i32_0 : i32, i32
  }
  func.func @transform_11(%arg0: i32) -> (i32, i32, i32) {
    %c0_i32 = arith.constant 0 : i32
    %c0_i32_0 = arith.constant 0 : i32
    %c0_i32_1 = arith.constant 0 : i32
    return %arg0, %c0_i32, %c0_i32_0 : i32, i32, i32
  }
}

</mosaic_0001>

<bundles_post_ra>
// kernel: tpu_custom_call.1
= control target key start
LH: loop header
LB: loop body
LE: loop exit
PB: predicated region body
PF: predicated region fallthrough
CT: control target
= control target key end

     0   :  { %16 = vsyncpa [#allocation3], 0  ;;  %s3279_s0 = inlined_call_operand.hbm [shape: f32[4,32,256], index: 0, kind: input, shape index: {}]   ;;  %s3280_s1 = inlined_call_operand.vmem [shape: bf16[16,32], index: 1, kind: input, shape index: {}]   ;;  %s3281_s2 = inlined_call_operand.vmem [shape: f32[16,1], index: 2, kind: input, shape index: {}]   ;;  %s3282_s3 = inlined_call_operand.vmem [shape: bf16[16,144], index: 3, kind: input, shape index: {}]   ;;  %s3283_s4 = inlined_call_operand.vmem [shape: f32[16,1], index: 4, kind: input, shape index: {}]   ;;  %s3284_s5 = inlined_call_operand.vmem [shape: bf16[32,16], index: 5, kind: input, shape index: {}]   ;;  %s3285_s6 = inlined_call_operand.vmem [shape: f32[32,1], index: 6, kind: input, shape index: {}]   ;;  %s3286_s7 = inlined_call_operand.vmem [shape: f32[32,2], index: 7, kind: input, shape index: {}]   ;;  %s3287_s8 = inlined_call_operand.vmem [shape: f32[1,2], index: 8, kind: input, shape index: {}]   ;;  %s3288_s9 = inlined_call_operand.vmem [shape: f32[32,2], index: 9, kind: input, shape index: {}]   ;;  %s3289_s10 = inlined_call_operand.vmem [shape: f32[32,1], index: 10, kind: input, shape index: {}]   ;;  %s3290_s11 = inlined_call_operand.hbm [shape: f32[4,32,256], index: 11, kind: output, shape index: {}]  }
   0x1   :  { %18 = vsyncpa [#allocation3 + $0x1], 0 }
   0x2   :  { %19 = vsyncpa [#allocation4], 0 }
   0x3   :  { %21 = vsyncpa [#allocation4 + $0x1], 0  ;;  %s2306_s17 = smov 0   ;;  %s2308_s18 = smov 0  }
   0x4   :  { %s2310_s19 = smov 0   ;;  %s2312_s20 = smov 0  }
   0x5 LB: > { %3296 = sst [smem:[#allocation8_spill]] %s2216_s17  ;;  %s2327_s21 = sadd.s32 4294967295, %s2228_s20   ;;  %s2228_s20 = sphi %s2312_s20, %s3321_s20   ;;  %s2224_s19 = sphi %s2310_s19, %s3326_s19   ;;  %s2220_s18 = sphi %s2308_s18, %s3325_s18   ;;  %s2216_s17 = sphi %s2306_s17, %s3324_s17  }
   0x6   : > { %3297 = sst [smem:[#allocation9_spill]] %s2224_s19  ;;  %s1841_s22 = sadd.s32 4294967294, %s2228_s20  }
   0x7   : > { %s2331_s23 = sadd.s32 1, %s2228_s20   ;;  %s34_s24 = sadd.s32 1, %s2224_s19 }
   0x8   : > { %3298 = sst [smem:[#allocation10_spill]] %s2331_s23  ;;  %s31_s25 = ssub.s32 %s2228_s20, %s2331_s23 }
   0x9   : > { %p41_p0 = scmp.ne.s32.totalorder %s2224_s19, %s2220_s18  ;;  %p32_p1 = scmp.eq.s32.totalorder %s31_s25, 0 }
   0xa   : > { %p42_p2 = scmp.eq.s32.totalorder %s2228_s20, 0  ;;  %p47_p3 = scmp.ne.s32.totalorder %s2220_s18, %s2216_s17 }
   0xb   : > { %p48_p4 = scmp.eq.s32.totalorder %s2327_s21, 0  ;;  %p281_p7 = scmp.eq.s32.totalorder %s2327_s21, 1 }
   0xc   : > { %s2343_s26 = scalar_select %p32_p1, %s2224_s19, %s34_s24  }
   0xd   : > { %p2345_p5 = por %p42_p2, %p41_p0  ;;  %p2349_p6 = por %p48_p4, %p47_p3 }
   0xe   : > { %3299 = sst [smem:[#allocation11_spill]] %s2343_s26  ;;  %p287_p8 = scmp.eq.s32.totalorder %s1841_s22, 1 }
   0xf   : > { %p1947_p10 = scmp.lt.s32.totalorder %s2228_s20, 2  ;;  %p2356_p11 = por %p281_p7, %p41_p0 }
  0x10   : > { %p2360_p12 = por %p287_p8, %p47_p3  ;;  %s337_s12 = sand.u32 1, %s2224_s19  }
  0x11   : > { %s1926_s13 = sshll.u32 %s2228_s20, 7  ;;  %s1844_s14 = sshll.u32 %s337_s12, 7 }
  0x12   : > { %s3303_s30 = scalar_select %p2360_p12, 1, 0 }
  0x13   : > { %s347_s24 = scalar_lea.hbm %s3279_s0, %s1926_s13  ;;  %s341_s22 = scalar_lea.vmem [#allocation2], %s1844_s14 }
  0x14   : > { %3304 = sst [smem:[#allocation12_spill]] %s3303_s30  ;;  %s348_s25 = sshll.u32 %s347_s24, 4  ;;  %s349_s25 = int_to_ptr.hbm [resolvable:$true] %s348_s25 }
  0x15   : > { %s350_s26 = sshll.u32 %s341_s22, 4  ;;  %p2371_p13 = pnand %p1947_p10, %p2345_p5  ;;  %s351_s26 = int_to_ptr.vmem [resolvable:$true] %s350_s26 }
  0x16   : > { %p1848_p0 = scmp.ge.s32.totalorder %s2228_s20, 1  ;;  %p358_p1 = scmp.lt.s32.totalorder %s2228_s20, 3 }
  0x17   : > { %s338_s19 = scalar_lea.sflag [#allocation3], %s337_s12  ;;  %s2132_s30 = sshra.s32 %s349_s25, 4  ;;  %s2133_s30 = int_to_ptr.hbm [resolvable:$true] %s2132_s30 }
  0x18   : > { %s2134_s17 = scalar_lea.hbm %s2133_s30, 128  ;;  %p2136_p3 = pneg %p2371_p13 }
  0x19   : > { %p2135_p2 = scmp.ne.s32.totalorder %s2133_s30, %s2134_s17  ;;  %s2139_s27 = scalar_lea.hbm %s3279_s0, 256 }
  0x1a   : > { %p2140_p5 = scmp.lt.s32.totalorder %s2133_s30, %s3279_s0  ;;  %p2141_p8 = scmp.lt.s32.totalorder %s2139_s27, %s2134_s17 }
  0x1b   : > { %p2137_p4 = pnand %p2136_p3, %p2135_p2 }
  0x1c   : > { %p2142_p10 = por %p2141_p8, %p2140_p5 }
  0x1d   : > { %p2138_p7 = pneg %p2137_p4 }
  0x1f   : > { %p2143_p9 = pnand %p2142_p10, %p2138_p7 }
  0x21   : > { %2146 = shalt.err (!%p2143_p9)
}
  0x22   : > { %s2230_s12 = smov 256   ;;  %s2231_s24 = smov 16  }
  0x23   : > { %1942 = dma.hbm_to_vmem [thread:$0]  (!%p2371_p13), %s349_s25, 2048, %s351_s26, %s338_s19, %s2230_s12, %s2230_s12, %s2231_s24  }
  0x24   : > { %p359_p2 = pnand %p1848_p0, %p358_p1 }
  0x25   : > { %s2392_s22 = sand.u32 (!%p359_p2), 1, %s2220_s18  }
  0x26   : > { %362 = sbr.rel (%p359_p2) target bundleno = 1360 (0x550), region = 64  ;;  %s1849_s17 = sshll.u32 (!%p359_p2), %s2392_s22, 7 }
  0x27   : > { %s365_s30 = scalar_lea.sflag (!%p359_p2), [#allocation3], %s2392_s22  ;;  %s2398_s13 = scalar_lea.vmem (!%p359_p2), [#allocation2], %s1849_s17 }
  0x2b   : > { %2207 = dma.done.wait (%p2349_p6), %s365_s30, 2048  }
  0x2c   : > { %2209 = vsyncadd (%p2349_p6), %s365_s30, 4294965248  ;;  %v2232_v0 = vmov 0   ;;  %v415_v1 = vld [vmem:[%s2398_s13 + $0x20] sm:$0xff]  ;;  %v417_v2 = vld [vmem:[%s2398_s13 + $0x30] sm:$0xff]  ;;  %vm455_vm0 = vcmask 261120   ;;  %s2233_s27 = smov 17  }
  0x2d   : > { %1997 = vset.pattern.permute.xlu0 %v2232_v0  ;;  %2088 = vset.pattern.permute.xlu1 %v2232_v0  ;;  %v416_v3 = vld [vmem:[%s2398_s13 + $0x28] sm:$0xff]  ;;  %v434_v4 = vpack.c.bf16 %v417_v2, %v415_v1  ;;  %v418_v5 = vld [vmem:[%s2398_s13 + $0x38] sm:$0xff]  ;;  %v1855_v6 = vld [vmem:[%s2398_s13 + $0x60] sm:$0xff]  ;;  %vm612_vm1 = vcmask 138240   ;;  %s2234_s15 = smov 96   ;;  %s2235_s16 = smov 112  }
  0x2e   : > { %2089 = vset.pattern.permute.xlu2 %v2232_v0  ;;  %v1857_v7 = vld [vmem:[%s2398_s13 + $0x70] sm:$0xff]  ;;  %v435_v8 = vpack.c.bf16 %v418_v5, %v416_v3  ;;  %v1856_v10 = vld [vmem:[%s2398_s13 + $0x68] sm:$0xff]  ;;  %v1858_v11 = vld [vmem:[%s2398_s13 + $0x78] sm:$0xff]  ;;  %s2236_s12 = smov 110   ;;  %s2237_s24 = smov 95   ;;  %vm767_vm2 = vcmask 916480  }
  0x2f   : > { %v436_v9 = vpack.c.bf16 %v1857_v7, %v1855_v6  ;;  %v411_v12 = vld [vmem:[%s2398_s13] sm:$0xff]  ;;  %465 = vmatpush.bf16.msra.mxu0 %v434_v4  ;;  %v437_v13 = vpack.c.bf16 %v1858_v11, %v1856_v10  ;;  %v413_v14 = vld [vmem:[%s2398_s13 + $0x10] sm:$0xff]  ;;  %v412_v15 = vld [vmem:[%s2398_s13 + $0x8] sm:$0xff]  ;;  %s2238_s30 = smov 111   ;;  %s2239_s19 = smov 94   ;;  %vm857_vm3 = vcmask 900096  }
  0x30   : > { %v414_v16 = vld [vmem:[%s2398_s13 + $0x18] sm:$0xff]  ;;  %479 = vmatpush.bf16.msra.mxu1 %v435_v8  ;;  %v430_v17 = vpack.c.bf16 %v413_v14, %v411_v12  ;;  %v1851_v19 = vld [vmem:[%s2398_s13 + $0x40] sm:$0xff]  ;;  %v1853_v20 = vld [vmem:[%s2398_s13 + $0x50] sm:$0xff]  ;;  %s2240_s23 = smov 126   ;;  %s2241_s26 = smov 127   ;;  %vm906_vm4 = vcmask 785408  }
  0x31   : > { %493 = vmatpush.bf16.msra.mxu2 %v436_v9  ;;  %v431_v18 = vpack.c.bf16 %v414_v16, %v412_v15  ;;  %v1852_v21 = vld [vmem:[%s2398_s13 + $0x48] sm:$0xff]  ;;  %507 = vmatpush.bf16.msra.mxu3 %v437_v13  ;;  %v432_v22 = vpack.c.bf16 %v1853_v20, %v1851_v19  ;;  %v1854_v23 = vld [vmem:[%s2398_s13 + $0x58] sm:$0xff]  ;;  %v438_v24 = vld [vmem:[%s3281_s2] sm:$0xff]  ;;  %vm996_vm5 = vcmask 769024   ;;  %vm718_vm6 = vcmask 1031168   ;;  %s2182_s25 = scalar_lea.hbm %s3290_s11, 256 }
  0x32   : > { %v433_v25 = vpack.c.bf16 %v1854_v23, %v1852_v21  ;;  %v1927_v26 = vld [vmem:[%s3280_s1] sm:$0xff]  ;;  %442 = vperm.xlu0 %1997, %v438_v24   ;;  %v439_v27 = vld [vmem:[%s3281_s2 + $0x8] sm:$0xff]  ;;  %vm955_vm9 = vcmask 777216   ;;  %vm816_vm12 = vcmask 908288   ;;  %vm673_vm15 = vcmask 1039360  }
  0x33   : > { %466 = vmatpush.bf16.msra.mxu0 %v430_v17 }
  0x34   : > { %480 = vmatpush.bf16.msra.mxu1 %v431_v18 }
  0x35   : > { %494 = vmatpush.bf16.msra.mxu2 %v432_v22  ;;  %508 = vmatpush.bf16.msra.mxu3 %v433_v25 }
  0x36   : > { %1863 = vmatmul.msk.bf16.vlgmr.msra.gmra.mxu0 %vm455_vm0, %v1927_v26 }
  0x37   : > { %1864 = vmatmul.msk.bf16.vlgmr.msra.gmra.mxu1 %vm455_vm0, %v1927_v26 }
  0x38   : > { %1865 = vmatmul.msk.bf16.vlgmr.msra.gmra.mxu2 %vm455_vm0, %v1927_v26  ;;  %1866 = vmatmul.msk.bf16.vlgmr.msra.gmra.mxu3 %vm455_vm0, %v1927_v26  ;;  %vm1092_vm0 = vcmask 130048  }
  0x3a   : > { %447 = vperm.xlu0 %1997, %v439_v27  }
  0xa4   : > { %v443_v28 = vpop.permute.xlu0 %442 }
  0xac   : > { %v448_v33 = vpop.permute.xlu0 %447 }
  0xb3   : > { %v468_v29 = vpop.f32.mrf.mxu0 }
  0xb4   : > { %v469_v30 = vadd.f32 %v468_v29, %v443_v28  ;;  %v482_v31 = vpop.f32.mrf.mxu1 }
  0xb5   : > { %v483_v34 = vadd.f32 %v482_v31, %v443_v28 }
  0xb6   : > { %v515_v32 = vmax.f32 %v469_v30, 0.0 }
  0xb7   : > { %v516_v41 = vmax.f32 %v483_v34, 0.0 }
  0xb8   : > { %604 = vrot.lane.b32.xlu1 %v515_v32, %s2233_s27 }
  0xbb   : > { %v496_v35 = vpop.f32.mrf.mxu2  ;;  %v510_v37 = vpop.f32.mrf.mxu3 }
  0xbc   : > { %v497_v36 = vadd.f32 %v496_v35, %v443_v28  ;;  %v470_v38 = vpop.f32.mrf.mxu0  ;;  %v484_v43 = vpop.f32.mrf.mxu1  ;;  %v511_v45 = vadd.f32 %v510_v37, %v443_v28 }
  0xbd   : > { %v471_v39 = vadd.f32 %v470_v38, %v448_v33  ;;  %v485_v44 = vadd.f32 %v484_v43, %v448_v33 }
  0xbe   : > { %v517_v40 = vmax.f32 %v497_v36, 0.0  ;;  %v518_v50 = vmax.f32 %v511_v45, 0.0 }
  0xbf   : > { %v519_v42 = vmax.f32 %v471_v39, 0.0  ;;  %v520_v48 = vmax.f32 %v485_v44, 0.0  ;;  %v523_v44 = vlaneseq }
  0xc0   : > { %629 = vrot.lane.b32.xlu0 %v517_v40, %s2233_s27  ;;  %606 = vrot.lane.b32.xlu1 %v516_v41, %s2233_s27 }
  0xc1   : > { %608 = vrot.lane.b32.xlu2 %v519_v42, %s2233_s27 }
  0xc3   : > { %v512_v46 = vpop.f32.mrf.mxu3  ;;  %v498_v51 = vpop.f32.mrf.mxu2 }
  0xc4   : > { %v513_v47 = vadd.f32 %v512_v46, %v448_v33  ;;  %v499_v52 = vadd.f32 %v498_v51, %v448_v33 }
  0xc6   : > { %v522_v49 = vmax.f32 %v513_v47, 0.0  ;;  %v521_v53 = vmax.f32 %v499_v52, 0.0 }
  0xc8   : > { %635 = vrot.lane.b32.xlu0 %v522_v49, %s2233_s27  ;;  %631 = vrot.lane.b32.xlu1 %v518_v50, %s2233_s27 }
  0xc9   : > { %610 = vrot.lane.b32.xlu2 %v520_v48, %s2233_s27  ;;  %v2638_v48 = vand.u32 127, %v523_v44 }
  0xcb   : > { %v527_v49 = vadd.s32 384, %v2638_v48 }
  0xd1   : > { %633 = vrot.lane.b32.xlu2 %v521_v53, %s2233_s27  ;;  %v553_v53 = vand.u32 15, %v527_v49  ;;  %v1224_v49 = vld [vmem:[%s3285_s6] sm:$0xff] }
  0xd3   : > { %vm579_vm7 = vcmp.ge.s32.totalorder %v553_v53, 1  ;;  %vm591_vm8 = vcmp.lt.s32.totalorder %v553_v53, 15 }
 0x11b   : > { %v609_v54 = vpop.permute.xlu2 %608 }
 0x11c   : > { %v2521_v8 = vsel %vm612_vm1, 0.0, %v609_v54 }
 0x123   : > { %v611_v57 = vpop.permute.xlu2 %610 }
 0x124   : > { %v2439_v61 = vsel %vm612_vm1, %v611_v57, 0.0  ;;  %v2512_v6 = vsel %vm612_vm1, %v609_v54, %v611_v57 }
 0x125   : > { %v2023_v9 = vpack.i.bf16 %v2512_v6, %v2521_v8 }
 0x12a   : > { %v605_v55 = vpop.permute.xlu1 %604 }
 0x12b   : > { %v2430_v56 = vsel %vm612_vm1, 0.0, %v605_v55  ;;  %v634_v7 = vpop.permute.xlu2 %633 }
 0x12c   : > { %894 = vrot.lane.b32.xlu0 %v2430_v56, %s2234_s15  ;;  %v2585_v29 = vsel %vm612_vm1, 0.0, %v634_v7 }
 0x132   : > { %v607_v58 = vpop.permute.xlu1 %606  ;;  %v630_v1 = vpop.permute.xlu0 %629 }
 0x133   : > { %v2435_v59 = vsel %vm612_vm1, %v605_v55, %v607_v58  ;;  %v623_v60 = vsel %vm612_vm1, %v607_v58, 0.0  ;;  %v2475_v3 = vsel %vm612_vm1, 0.0, %v630_v1  ;;  %v2242_v58 = vmov 0.0  }
 0x134   : > { %757 = vrot.lane.b32.xlu0 %v2435_v59, %s2235_s16  ;;  %847 = vrot.lane.b32.xlu2 %v2435_v59, %s2236_s12  ;;  %v1998_v62 = vpack.i.bf16 %v2435_v59, %v2430_v56  ;;  %v2448_v63 = vpack.i.bf16 %v2439_v61, %v623_v60 }
 0x136   : > { %1999 = vrot.lane.b32.xlu1 %v1998_v62, %s2237_s24 }
 0x13a   : > { %v632_v0 = vpop.permute.xlu1 %631  ;;  %v636_v11 = vpop.permute.xlu0 %635 }
 0x13b   : > { %v2468_v2 = vsel %vm612_vm1, %v630_v1, %v632_v0  ;;  %v2492_v5 = vsel %vm612_vm1, %v632_v0, 0.0  ;;  %v2578_v25 = vsel %vm612_vm1, %v634_v7, %v636_v11  ;;  %v2608_v37 = vsel %vm612_vm1, %v636_v11, 0.0 }
 0x13c   : > { %898 = vrot.lane.b32.xlu0 %v623_v60, %s2234_s15  ;;  %2004 = vrot.lane.b32.xlu2 %v1998_v62, %s2238_s30  ;;  %v2479_v4 = vpack.i.bf16 %v2468_v2, %v2475_v3  ;;  %v2592_v31 = vpack.i.bf16 %v2578_v25, %v2585_v29  ;;  %v2616_v38 = vpack.i.bf16 %v2608_v37, %v2492_v5  ;;  %v2681_v7 = vsel %vm591_vm8, 1.0, %v2242_v58 }
 0x13e   : > { %896 = vrot.lane.b32.xlu1 %v2435_v59, %s2234_s15 }
 0x144   : > { %986 = vrot.lane.b32.xlu0 %v2435_v59, %s2239_s19  ;;  %755 = vrot.lane.b32.xlu2 %v2430_v56, %s2235_s16 }
 0x146   : > { %845 = vrot.lane.b32.xlu1 %v2430_v56, %s2236_s12 }
 0x14c   : > { %984 = vrot.lane.b32.xlu0 %v2430_v56, %s2239_s19  ;;  %708 = vrot.lane.b32.xlu2 %v2435_v59, %s2240_s23 }
 0x14e   : > { %706 = vrot.lane.b32.xlu1 %v2430_v56, %s2240_s23 }
 0x154   : > { %849 = vrot.lane.b32.xlu2 %v623_v60, %s2236_s12  ;;  %868 = vrot.lane.b32.xlu0 %v2468_v2, %s2236_s12 }
 0x156   : > { %988 = vrot.lane.b32.xlu1 %v623_v60, %s2239_s19 }
 0x15c   : > { %776 = vrot.lane.b32.xlu0 %v2475_v3, %s2235_s16  ;;  %2014 = vrot.lane.b32.xlu2 %v2479_v4, %s2237_s24 }
 0x15e   : > { %2009 = vrot.lane.b32.xlu1 %v1998_v62, %s2241_s26 }
 0x164   : > { %729 = vrot.lane.b32.xlu0 %v2468_v2, %s2240_s23  ;;  %917 = vrot.lane.b32.xlu2 %v2468_v2, %s2234_s15 }
 0x166   : > { %759 = vrot.lane.b32.xlu1 %v623_v60, %s2235_s16 }
 0x16c   : > { %919 = vrot.lane.b32.xlu0 %v2492_v5, %s2234_s15  ;;  %866 = vrot.lane.b32.xlu2 %v2475_v3, %s2236_s12 }
 0x16e   : > { %710 = vrot.lane.b32.xlu1 %v623_v60, %s2240_s23  ;;  %v2664_v60 = vsel %vm579_vm7, 1.0, %v2242_v58 }
 0x174   : > { %870 = vrot.lane.b32.xlu0 %v2492_v5, %s2236_s12  ;;  %2019 = vrot.lane.b32.xlu2 %v2479_v4, %s2238_s30 }
 0x176   : > { %915 = vrot.lane.b32.xlu1 %v2475_v3, %s2234_s15 }
 0x17c   : > { %1007 = vrot.lane.b32.xlu0 %v2468_v2, %s2239_s19  ;;  %727 = vrot.lane.b32.xlu2 %v2475_v3, %s2240_s23 }
 0x17e   : > { %778 = vrot.lane.b32.xlu1 %v2468_v2, %s2235_s16 }
 0x184   : > { %902 = vrot.lane.b32.xlu0 %v2512_v6, %s2234_s15  ;;  %1005 = vrot.lane.b32.xlu2 %v2475_v3, %s2239_s19 }
 0x186   : > { %853 = vrot.lane.b32.xlu1 %v2512_v6, %s2236_s12 }
 0x18c   : > { %851 = vrot.lane.b32.xlu0 %v2521_v8, %s2236_s12  ;;  %2024 = vrot.lane.b32.xlu2 %v2023_v9, %s2237_s24 }
 0x18e   : > { %v848_v10 = vpop.permute.xlu2 %847  ;;  %2034 = vrot.lane.b32.xlu1 %v2448_v63, %s2237_s24 }
 0x194   : > { %2029 = vrot.lane.b32.xlu0 %v2023_v9, %s2238_s30  ;;  %900 = vrot.lane.b32.xlu2 %v2521_v8, %s2234_s15 }
 0x196   : > { %v2533_v12 = vpop.permute.xlu2 %2004  ;;  %761 = vrot.lane.b32.xlu1 %v2521_v8, %s2235_s16 }
 0x19c   : > { %712 = vrot.lane.b32.xlu0 %v2521_v8, %s2240_s23  ;;  %763 = vrot.lane.b32.xlu2 %v2512_v6, %s2235_s16 }
 0x19e   : > { %v895_v13 = vpop.permute.xlu0 %894  ;;  %v756_v14 = vpop.permute.xlu2 %755  ;;  %904 = vrot.lane.b32.xlu1 %v2439_v61, %s2234_s15 }
 0x1a4   : > { %855 = vrot.lane.b32.xlu0 %v2439_v61, %s2236_s12  ;;  %992 = vrot.lane.b32.xlu2 %v2512_v6, %s2239_s19 }
 0x1a6   : > { %v2547_v15 = vpop.permute.xlu0 %757  ;;  %v2549_v16 = vpop.permute.xlu2 %708  ;;  %714 = vrot.lane.b32.xlu1 %v2512_v6, %s2240_s23 }
 0x1a7   : > { %v2555_v17 = vsel %vm767_vm2, %v756_v14, %v2547_v15 }
 0x1a8   : > { %v2557_v18 = vpop.permute.xlu1 %1999 }
 0x1a9   : > { %v2002_v1 = vunpack.i.h.bf16 %v2557_v18 }
 0x1ac   : > { %994 = vrot.lane.b32.xlu0 %v2439_v61, %s2239_s19  ;;  %2039 = vrot.lane.b32.xlu2 %v2023_v9, %s2241_s26 }
 0x1ae   : > { %v899_v19 = vpop.permute.xlu0 %898  ;;  %v850_v20 = vpop.permute.xlu2 %849  ;;  %990 = vrot.lane.b32.xlu1 %v2521_v8, %s2239_s19 }
 0x1af   : > { %v2565_v21 = vsel %vm857_vm3, %v848_v10, %v850_v20 }
 0x1b0   : > { %v897_v22 = vpop.permute.xlu1 %896 }
 0x1b1   : > { %v2568_v23 = vsel %vm906_vm4, %v895_v13, %v897_v22  ;;  %v2571_v24 = vsel %vm906_vm4, %v897_v22, %v899_v19 }
 0x1b4   : > { %2044 = vrot.lane.b32.xlu0 %v2448_v63, %s2238_s30  ;;  %765 = vrot.lane.b32.xlu2 %v2439_v61, %s2235_s16 }
 0x1b6   : > { %v987_v26 = vpop.permute.xlu0 %986  ;;  %923 = vrot.lane.b32.xlu1 %v2578_v25, %s2234_s15  ;;  %v2582_v27 = vpop.permute.xlu2 %2014 }
 0x1b8   : > { %v846_v28 = vpop.permute.xlu1 %845 }
 0x1b9   : > { %v2588_v30 = vsel %vm857_vm3, %v846_v28, %v848_v10 }
 0x1bc   : > { %2054 = vrot.lane.b32.xlu0 %v2592_v31, %s2237_s24  ;;  %716 = vrot.lane.b32.xlu2 %v2439_v61, %s2240_s23 }
 0x1be   : > { %v985_v32 = vpop.permute.xlu0 %984  ;;  %872 = vrot.lane.b32.xlu1 %v2585_v29, %s2236_s12  ;;  %v918_v33 = vpop.permute.xlu2 %917 }
 0x1bf   : > { %v2601_v34 = vsel %vm996_vm5, %v985_v32, %v987_v26  ;;  %v532_v32 = vand.u32 15, %v2638_v48 }
 0x1c0   : > { %v707_v35 = vpop.permute.xlu1 %706 }
 0x1c1   : > { %v2605_v36 = vsel %vm718_vm6, %v707_v35, %v2549_v16  ;;  %vm576_vm10 = vcmp.ge.s32.totalorder %v532_v32, 1  ;;  %vm588_vm11 = vcmp.lt.s32.totalorder %v532_v32, 15 }
 0x1c2   : > { %v2726_v53 = vsel %vm588_vm11, 1.0, %v2242_v58 }
 0x1c4   : > { %921 = vrot.lane.b32.xlu0 %v2585_v29, %s2234_s15  ;;  %2049 = vrot.lane.b32.xlu2 %v2448_v63, %s2241_s26 }
 0x1c6   : > { %2069 = vrot.lane.b32.xlu1 %v2616_v38, %s2237_s24  ;;  %v869_v39 = vpop.permute.xlu0 %868  ;;  %v867_v40 = vpop.permute.xlu2 %866 }
 0x1c7   : > { %v2621_v41 = vsel %vm857_vm3, %v867_v40, %v869_v39 }
 0x1c8   : > { %v989_v42 = vpop.permute.xlu1 %988 }
 0x1c9   : > { %v2624_v43 = vsel %vm996_vm5, %v987_v26, %v989_v42 }
 0x1cc   : > { %2059 = vrot.lane.b32.xlu0 %v2592_v31, %s2238_s30  ;;  %874 = vrot.lane.b32.xlu2 %v2578_v25, %s2236_s12 }
 0x1ce   : > { %733 = vrot.lane.b32.xlu1 %v2585_v29, %s2240_s23  ;;  %v2632_v45 = vpop.permute.xlu0 %776  ;;  %v2634_v46 = vpop.permute.xlu2 %2019 }
 0x1d0   : > { %v2636_v47 = vpop.permute.xlu1 %2009 }
 0x1d4   : > { %784 = vrot.lane.b32.xlu0 %v2578_v25, %s2235_s16  ;;  %782 = vrot.lane.b32.xlu2 %v2585_v29, %s2235_s16 }
 0x1d6   : > { %925 = vrot.lane.b32.xlu1 %v2608_v37, %s2234_s15  ;;  %v2647_v50 = vpop.permute.xlu0 %729  ;;  %v2649_v51 = vpop.permute.xlu2 %727  ;;  %s3199_s15 = scalar_lea.vmem [#allocation5], %s1849_s17  ;;  %s1933_s17 = sshll.u32 %s2327_s21, 7 }
 0x1d7   : > { %s1764_s24 = scalar_lea.hbm %s3290_s11, %s1933_s17  ;;  %s1765_s21 = sshll.u32 %s3199_s15, 4  ;;  %s1766_s21 = int_to_ptr.vmem [resolvable:$true] %s1765_s21 }
 0x1d8   : > { %v760_v52 = vpop.permute.xlu1 %759 }
 0x1d9   : > { %v2653_v54 = vsel %vm767_vm2, %v2547_v15, %v760_v52 }
 0x1dc   : > { %2064 = vrot.lane.b32.xlu0 %v2479_v4, %s2241_s26  ;;  %735 = vrot.lane.b32.xlu2 %v2578_v25, %s2240_s23  ;;  %v2001_v4 = vunpack.i.l.bf16 %v2557_v18 }
 0x1de   : > { %876 = vrot.lane.b32.xlu1 %v2608_v37, %s2236_s12  ;;  %v920_v55 = vpop.permute.xlu0 %919  ;;  %v2661_v57 = vpop.permute.xlu2 %1005  ;;  %v956_v18 = vsel %vm955_vm9, %v2001_v4, %v2002_v1 }
 0x1df   : > { %v928_v61 = vsel %vm906_vm4, %v918_v33, %v920_v55 }
 0x1e0   : > { %v2668_v62 = vmul.f32 %v2664_v60, %v928_v61  ;;  %v711_v63 = vpop.permute.xlu1 %710 }
 0x1e1   : > { %v2672_v0 = vsel %vm718_vm6, %v2549_v16, %v711_v63  ;;  %v886_v63 = vmul.f32 %v2726_v53, %v2588_v30  ;;  %v2006_v30 = vunpack.i.l.bf16 %v2533_v12 }
 0x1e4   : > { %780 = vrot.lane.b32.xlu0 %v2492_v5, %s2235_s16  ;;  %1013 = vrot.lane.b32.xlu2 %v2578_v25, %s2239_s19 }
 0x1e6   : > { %1011 = vrot.lane.b32.xlu1 %v2585_v29, %s2239_s19  ;;  %v871_v9 = vpop.permute.xlu0 %870  ;;  %v2025_v10 = vpop.permute.xlu2 %2024 }
 0x1e7   : > { %v879_v11 = vsel %vm857_vm3, %v869_v39, %v871_v9  ;;  %v2027_v13 = vunpack.i.h.bf16 %v2025_v10  ;;  %v2026_v14 = vunpack.i.l.bf16 %v2025_v10 }
 0x1e8   : > { %v2687_v15 = vmul.f32 %v2681_v7, %v879_v11  ;;  %v916_v16 = vpop.permute.xlu1 %915  ;;  %v1227_v11 = vld [vmem:[%s3285_s6 + $0x18] sm:$0xff] }
 0x1e9   : > { %v2690_v19 = vsel %vm906_vm4, %v916_v16, %v918_v33  ;;  %v958_v20 = vsel %vm955_vm9, %v2026_v14, %v2027_v13 }
 0x1ea   : > { %v1061_v22 = vpack.c.bf16 %v958_v20, %v956_v18  ;;  %v2007_v20 = vunpack.i.h.bf16 %v2533_v12  ;;  %v2016_v12 = vunpack.i.l.bf16 %v2582_v27 }
 0x1ec   : > { %737 = vrot.lane.b32.xlu0 %v2608_v37, %s2240_s23  ;;  %2079 = vrot.lane.b32.xlu2 %v2616_v38, %s2238_s30  ;;  %s1752_s30 = scalar_lea.sflag [#allocation4], %s2392_s22 }
 0x1ed   : > { %1096 = vmatpush.bf16.msrb.mxu0 %v1061_v22  ;;  %v525_v22 = vadd.s32 128, %v2638_v48 }
 0x1ee   : > { %2074 = vrot.lane.b32.xlu1 %v2592_v31, %s2241_s26  ;;  %v2700_v26 = vpop.permute.xlu0 %1007  ;;  %v901_v28 = vpop.permute.xlu2 %900  ;;  %v2714_v31 = vsel %vm576_vm10, 1.0, %v2242_v58 }
 0x1ef   : > { %v935_v42 = vmul.f32 %v2714_v31, %v2568_v23 }
 0x1f0   : > { %v2703_v33 = vpop.permute.xlu1 %778 }
 0x1f4   : > { %2084 = vrot.lane.b32.xlu0 %v2616_v38, %s2241_s26  ;;  %731 = vrot.lane.b32.xlu2 %v2492_v5, %s2240_s23 }
 0x1f6   : > { %786 = vrot.lane.b32.xlu1 %v2608_v37, %s2235_s16  ;;  %v903_v35 = vpop.permute.xlu0 %902  ;;  %v2711_v39 = vpop.permute.xlu2 %763 }
 0x1f7   : > { %v909_v40 = vsel %vm906_vm4, %v901_v28, %v903_v35 }
 0x1f8   : > { %v939_v44 = vmul.f32 %v2714_v31, %v909_v40  ;;  %v854_v38 = vpop.permute.xlu1 %853 }
 0x1fa   : > { %v1057_v52 = vpack.c.bf16 %v939_v44, %v935_v42  ;;  %v817_v44 = vsel %vm816_vm12, %v2006_v30, %v2007_v20 }
 0x1fc   : > { %1230 = vperm.xlu0 %1997, %v1224_v49   ;;  %1015 = vrot.lane.b32.xlu2 %v2608_v37, %s2239_s19 }
 0x1fd   : > { %1097 = vmatpush.bf16.msrb.mxu0 %v1057_v52  ;;  %v539_v52 = vand.u32 15, %v525_v22 }
 0x1fe   : > { %1009 = vrot.lane.b32.xlu1 %v2492_v5, %s2239_s19  ;;  %v852_v23 = vpop.permute.xlu0 %851  ;;  %v2730_v55 = vpop.permute.xlu2 %992 }
 0x1ff   : > { %v860_v61 = vsel %vm857_vm3, %v852_v23, %v854_v38  ;;  %vm577_vm13 = vcmp.ge.s32.totalorder %v539_v52, 1  ;;  %vm589_vm14 = vcmp.lt.s32.totalorder %v539_v52, 15  ;;  %v747_v52 = vmul.f32 %v2726_v53, %v2605_v36 }
 0x200   : > { %v890_v4 = vmul.f32 %v2726_v53, %v860_v61  ;;  %v2035_v9 = vpop.permute.xlu1 %2034 }
 0x201   : > { %v2037_v10 = vunpack.i.h.bf16 %v2035_v9  ;;  %v2036_v37 = vunpack.i.l.bf16 %v2035_v9 }
 0x202   : > { %v1053_v14 = vpack.c.bf16 %v890_v4, %v886_v63  ;;  %v796_v63 = vmul.f32 %v2714_v31, %v2555_v17 }
 0x203   : > { %v957_v5 = vsel %vm955_vm9, %v2002_v1, %v2036_v37  ;;  %v959_v16 = vsel %vm955_vm9, %v2027_v13, %v2037_v10 }
 0x204   : > { %1245 = vperm.xlu0 %1997, %v1227_v11   ;;  %1098 = vmatpush.bf16.msrb.mxu0 %v1053_v14  ;;  %v1062_v18 = vpack.c.bf16 %v959_v16, %v957_v5  ;;  %v2764_v11 = vsel %vm577_vm13, 1.0, %v2242_v58 }
 0x205   : > { %v936_v5 = vmul.f32 %v2764_v11, %v2571_v24 }
 0x206   : > { %v2744_v28 = vpop.permute.xlu0 %2029  ;;  %v2746_v32 = vpop.permute.xlu2 %2039  ;;  %1124 = vmatpush.bf16.msrb.mxu2 %v1062_v18  ;;  %v2771_v18 = vsel %vm589_vm14, 1.0, %v2242_v58 }
 0x207   : > { %v2032_v40 = vunpack.i.h.bf16 %v2744_v28  ;;  %v2031_v1 = vunpack.i.l.bf16 %v2744_v28  ;;  %v2041_v24 = vunpack.i.l.bf16 %v2746_v32 }
 0x208   : > { %v762_v13 = vpop.permute.xlu1 %761 }
 0x209   : > { %v770_v42 = vsel %vm767_vm2, %v762_v13, %v2711_v39  ;;  %v819_v49 = vsel %vm816_vm12, %v2031_v1, %v2032_v40  ;;  %v887_v13 = vmul.f32 %v2771_v18, %v2565_v21 }
 0x20a   : > { %v800_v23 = vmul.f32 %v2714_v31, %v770_v42  ;;  %v1049_v61 = vpack.c.bf16 %v819_v49, %v817_v44  ;;  %v2042_v44 = vunpack.i.h.bf16 %v2746_v32 }
 0x20c   : > { %1099 = vmatpush.bf16.msrb.mxu0 %v1049_v61  ;;  %v1045_v10 = vpack.c.bf16 %v800_v23, %v796_v63  ;;  %v2011_v63 = vunpack.i.l.bf16 %v2636_v47 }
 0x20e   : > { %v713_v4 = vpop.permute.xlu0 %712  ;;  %v2761_v9 = vpop.permute.xlu2 %765 }
 0x210   : > { %v905_v37 = vpop.permute.xlu1 %904  ;;  %1100 = vmatpush.bf16.msrb.mxu0 %v1045_v10  ;;  %v1071_v10 = vld [vmem:[%s3283_s4] sm:$0xff] }
 0x211   : > { %v910_v14 = vsel %vm906_vm4, %v903_v35, %v905_v37  ;;  %1075 = vperm.xlu1 %2088, %v1071_v10   ;;  %v771_v10 = vsel %vm767_vm2, %v2711_v39, %v2761_v9 }
 0x212   : > { %v940_v16 = vmul.f32 %v2764_v11, %v910_v14  ;;  %v801_v9 = vmul.f32 %v2764_v11, %v771_v10  ;;  %v654_v10 = vmul.f32 %v2764_v11, %v2512_v6  ;;  %v2022_v6 = vunpack.i.h.bf16 %v2634_v46 }
 0x214   : > { %v1058_v17 = vpack.c.bf16 %v940_v16, %v936_v5  ;;  %v1026_v16 = vmul.f32 %v2771_v18, %v2624_v43 }
 0x216   : > { %v856_v30 = vpop.permute.xlu0 %855  ;;  %v717_v22 = vpop.permute.xlu2 %716  ;;  %1125 = vmatpush.bf16.msrb.mxu2 %v1058_v17 }
 0x217   : > { %v861_v1 = vsel %vm857_vm3, %v854_v38, %v856_v30  ;;  %v2012_v38 = vunpack.i.h.bf16 %v2636_v47 }
 0x218   : > { %v891_v35 = vmul.f32 %v2771_v18, %v861_v1  ;;  %v715_v42 = vpop.permute.xlu1 %714 }
 0x219   : > { %v721_v49 = vsel %vm718_vm6, %v713_v4, %v715_v42  ;;  %v676_v4 = vsel %vm673_vm15, %v2041_v24, %v2042_v44  ;;  %v674_v5 = vsel %vm673_vm15, %v2011_v63, %v2012_v38  ;;  %v1877_v24 = vld [vmem:[%s3282_s3] sm:$0xf] }
 0x21a   : > { %v751_v23 = vmul.f32 %v2726_v53, %v721_v49  ;;  %v1054_v61 = vpack.c.bf16 %v891_v35, %v887_v13  ;;  %v1037_v1 = vpack.c.bf16 %v676_v4, %v674_v5  ;;  %v649_v13 = vmul.f32 %v2714_v31, %v2430_v56  ;;  %v1929_v56 = vld [vmem:[%s3282_s3 + $0x4] sm:$0xf0] }
 0x21b   : > { %v1025_v49 = vmul.f32 %v2726_v53, %v2601_v34  ;;  %v2822_v63 = vor.u32 %v1929_v56, %v1877_v24 }
 0x21c   : > { %1126 = vmatpush.bf16.msrb.mxu2 %v1054_v61  ;;  %v1041_v21 = vpack.c.bf16 %v751_v23, %v747_v52  ;;  %v653_v23 = vmul.f32 %v2714_v31, %v2521_v8  ;;  %v1879_v61 = vld [vmem:[%s3282_s3 + $0x8] sm:$0xf0] }
 0x21e   : > { %v995_v36 = vpop.permute.xlu0 %994  ;;  %v2791_v37 = vpop.permute.xlu2 %2049  ;;  %1101 = vmatpush.bf16.msrb.mxu0 %v1041_v21  ;;  %v1033_v34 = vpack.c.bf16 %v653_v23, %v649_v13  ;;  %v2017_v13 = vunpack.i.h.bf16 %v2582_v27 }
 0x21f   : > { %v1000_v14 = vsel %vm996_vm5, %v2730_v55, %v995_v36  ;;  %v2051_v24 = vunpack.i.l.bf16 %v2791_v37 }
 0x220   : > { %v1030_v17 = vmul.f32 %v2771_v18, %v1000_v14  ;;  %v991_v30 = vpop.permute.xlu1 %990 }
 0x221   : > { %v999_v35 = vsel %vm996_vm5, %v991_v30, %v2730_v55  ;;  %v1928_v55 = vld [vmem:[%s3282_s3 + $0x4] sm:$0xf]  ;;  %v526_v30 = vadd.s32 256, %v2638_v48  ;;  %v748_v48 = vmul.f32 %v2771_v18, %v2672_v0 }
 0x222   : > { %v1029_v52 = vmul.f32 %v2726_v53, %v999_v35  ;;  %1102 = vmatpush.bf16.msrb.mxu0 %v1037_v1  ;;  %v1066_v43 = vpack.c.bf16 %v1030_v17, %v1026_v16  ;;  %v2824_v21 = vor.u32 %v1928_v55, %v1879_v61  ;;  %v722_v17 = vsel %vm718_vm6, %v715_v42, %v717_v22  ;;  %v1072_v55 = vld [vmem:[%s3283_s4 + $0x8] sm:$0xff] }
 0x223   : > { %v797_v1 = vmul.f32 %v2764_v11, %v2653_v54  ;;  %v546_v42 = vand.u32 15, %v526_v30  ;;  %1080 = vperm.xlu2 %2089, %v1072_v55  }
 0x224   : > { %1145 = vmatpush.bf16.msrb.mxu3 %v1066_v43  ;;  %v1065_v53 = vpack.c.bf16 %v1029_v52, %v1025_v49  ;;  %v976_v43 = vsel %vm955_vm9, %v2016_v12, %v2017_v13 }
 0x225   : > { %v1046_v35 = vpack.c.bf16 %v801_v9, %v797_v1  ;;  %vm578_vm1 = vcmp.ge.s32.totalorder %v546_v42, 1  ;;  %vm590_vm7 = vcmp.lt.s32.totalorder %v546_v42, 15 }
 0x226   : > { %v2045_v8 = vpop.permute.xlu0 %2044  ;;  %v2826_v31 = vpop.permute.xlu2 %874  ;;  %1103 = vmatpush.bf16.msrb.mxu0 %v1033_v34  ;;  %1117 = vmatpush.bf16.msrb.mxu1 %v1065_v53  ;;  %v650_v34 = vmul.f32 %v2764_v11, %v2435_v59  ;;  %v2870_v53 = vsel %vm578_vm1, 1.0, %v2242_v58  ;;  %v2882_v59 = vsel %vm590_vm7, 1.0, %v2242_v58  ;;  %v2021_v58 = vunpack.i.l.bf16 %v2634_v46 }
 0x227   : > { %v2047_v4 = vunpack.i.h.bf16 %v2045_v8  ;;  %v2046_v36 = vunpack.i.l.bf16 %v2045_v8  ;;  %1884 = vmatmul.msk.bf16.vlgmr.msrb.gmra.mxu3 %vm1092_vm0, %v2824_v21  ;;  %v888_v30 = vmul.f32 %v2882_v59, %v2621_v41  ;;  %v788_v46 = vsel %vm767_vm2, %v2632_v45, %v2703_v33 }
 0x228   : > { %v2833_v14 = vpop.permute.xlu1 %923  ;;  %v1034_v9 = vpack.c.bf16 %v654_v10, %v650_v34  ;;  %v1017_v10 = vsel %vm996_vm5, %v2661_v57, %v2700_v26  ;;  %v1226_v57 = vld [vmem:[%s3285_s6 + $0x10] sm:$0xff] }
 0x229   : > { %1104 = vmatmul.bf16.vlgmr.msrb.gmra.mxu0 %v2822_v63  ;;  %1883 = vmatmul.msk.bf16.vlgmr.msrb.gmra.mxu1 %vm1092_vm0, %v2824_v21  ;;  %v818_v5 = vsel %vm816_vm12, %v2007_v20, %v2046_v36  ;;  %v820_v39 = vsel %vm816_vm12, %v2032_v40, %v2047_v4  ;;  %v752_v20 = vmul.f32 %v2771_v18, %v722_v17  ;;  %v2052_v40 = vunpack.i.h.bf16 %v2791_v37 }
 0x22a   : > { %v1050_v16 = vpack.c.bf16 %v820_v39, %v818_v5  ;;  %v675_v37 = vsel %vm673_vm15, %v2012_v38, %v2051_v24 }
 0x22b   : > { %v1042_v56 = vpack.c.bf16 %v752_v20, %v748_v48  ;;  %v677_v0 = vsel %vm673_vm15, %v2042_v44, %v2052_v40  ;;  %v937_v44 = vmul.f32 %v2870_v53, %v2690_v19  ;;  %v798_v48 = vmul.f32 %v2870_v53, %v788_v46  ;;  %1240 = vperm.xlu2 %2089, %v1226_v57  }
 0x22c   : > { %1127 = vmatpush.bf16.msrb.mxu2 %v1050_v16  ;;  %v1038_v61 = vpack.c.bf16 %v677_v0, %v675_v37 }
 0x22e   : > { %v2055_v28 = vpop.permute.xlu0 %2054  ;;  %v783_v54 = vpop.permute.xlu2 %782 }
 0x22f   : > { %v2057_v49 = vunpack.i.h.bf16 %v2055_v28  ;;  %v2056_v22 = vunpack.i.l.bf16 %v2055_v28 }
 0x230   : > { %v873_v52 = vpop.permute.xlu1 %872  ;;  %1128 = vmatpush.bf16.msrb.mxu2 %v1046_v35 }
 0x231   : > { %v978_v27 = vsel %vm955_vm9, %v2056_v22, %v2057_v49  ;;  %v880_v47 = vsel %vm857_vm3, %v873_v52, %v2826_v31 }
 0x232   : > { %v1063_v23 = vpack.c.bf16 %v978_v27, %v976_v43  ;;  %v892_v5 = vmul.f32 %v2882_v59, %v880_v47  ;;  %v739_v27 = vsel %vm718_vm6, %v2649_v51, %v2647_v50 }
 0x233   : > { %v749_v37 = vmul.f32 %v2882_v59, %v739_v27 }
 0x234   : > { %1129 = vmatpush.bf16.msrb.mxu2 %v1042_v56  ;;  %1152 = vmatpush.bf16.msra.mxu1 %v1063_v23  ;;  %v1055_v12 = vpack.c.bf16 %v892_v5, %v888_v30 }
 0x236   : > { %v922_v18 = vpop.permute.xlu0 %921  ;;  %v2885_v39 = vpop.permute.xlu2 %735 }
 0x237   : > { %v929_v32 = vsel %vm906_vm4, %v922_v18, %v2833_v14 }
 0x238   : > { %v941_v38 = vmul.f32 %v2870_v53, %v929_v32  ;;  %v2070_v8 = vpop.permute.xlu1 %2069  ;;  %1130 = vmatpush.bf16.msrb.mxu2 %v1038_v61 }
 0x239   : > { %v2072_v4 = vunpack.i.h.bf16 %v2070_v8  ;;  %v2071_v36 = vunpack.i.l.bf16 %v2070_v8 }
 0x23a   : > { %v1059_v16 = vpack.c.bf16 %v941_v38, %v937_v44 }
 0x23b   : > { %v979_v19 = vsel %vm955_vm9, %v2057_v49, %v2072_v4  ;;  %v977_v17 = vsel %vm955_vm9, %v2017_v13, %v2071_v36  ;;  %v837_v13 = vsel %vm816_vm12, %v2021_v58, %v2022_v6 }
 0x23c   : > { %v1064_v1 = vpack.c.bf16 %v979_v19, %v977_v17  ;;  %1131 = vmatpush.bf16.msrb.mxu2 %v1034_v9  ;;  %1153 = vmatpush.bf16.msra.mxu1 %v1059_v16 }
 0x23e   : > { %v2060_v11 = vpop.permute.xlu0 %2059  ;;  %1180 = vmatpush.bf16.msra.mxu0 %v1064_v1  ;;  %v2896_v24 = vpop.permute.xlu2 %1013 }
 0x23f   : > { %v2062_v20 = vunpack.i.h.bf16 %v2060_v11  ;;  %v2061_v28 = vunpack.i.l.bf16 %v2060_v11  ;;  %1132 = vmatmul.bf16.vlgmr.msrb.gmra.mxu2 %v2822_v63 }
 0x240   : > { %1154 = vmatpush.bf16.msra.mxu1 %v1055_v12  ;;  %v734_v35 = vpop.permute.xlu1 %733 }
 0x241   : > { %v839_v41 = vsel %vm816_vm12, %v2061_v28, %v2062_v20  ;;  %v741_v22 = vsel %vm718_vm6, %v734_v35, %v2885_v39  ;;  %v651_v28 = vmul.f32 %v2870_v53, %v2475_v3  ;;  %v655_v35 = vmul.f32 %v2870_v53, %v2585_v29 }
 0x242   : > { %v1051_v40 = vpack.c.bf16 %v839_v41, %v837_v13  ;;  %v753_v45 = vmul.f32 %v2882_v59, %v741_v22 }
 0x244   : > { %1155 = vmatpush.bf16.msra.mxu1 %v1051_v40  ;;  %v1043_v61 = vpack.c.bf16 %v753_v45, %v749_v37  ;;  %v1035_v40 = vpack.c.bf16 %v655_v35, %v651_v28 }
 0x246   : > { %v785_v49 = vpop.permute.xlu0 %784  ;;  %v2080_v0 = vpop.permute.xlu2 %2079 }
 0x247   : > { %v790_v42 = vsel %vm767_vm2, %v783_v54, %v785_v49  ;;  %v2082_v34 = vunpack.i.h.bf16 %v2080_v0  ;;  %v2081_v47 = vunpack.i.l.bf16 %v2080_v0 }
 0x248   : > { %v802_v52 = vmul.f32 %v2870_v53, %v790_v42  ;;  %v926_v43 = vpop.permute.xlu1 %925 }
 0x249   : > { %v930_v23 = vsel %vm906_vm4, %v2833_v14, %v926_v43  ;;  %v838_v38 = vsel %vm816_vm12, %v2022_v6, %v2081_v47 }
 0x24a   : > { %v942_v56 = vmul.f32 %v2664_v60, %v930_v23  ;;  %v1047_v55 = vpack.c.bf16 %v802_v52, %v798_v48 }
 0x24c   : > { %1156 = vmatpush.bf16.msra.mxu1 %v1047_v55  ;;  %v1060_v54 = vpack.c.bf16 %v942_v56, %v2668_v62  ;;  %v840_v62 = vsel %vm816_vm12, %v2062_v20, %v2082_v34 }
 0x24d   : > { %v1052_v36 = vpack.c.bf16 %v840_v62, %v838_v38 }
 0x24e   : > { %v2915_v18 = vpop.permute.xlu0 %2064  ;;  %1181 = vmatpush.bf16.msra.mxu0 %v1060_v54 }
 0x24f   : > { %v2067_v19 = vunpack.i.h.bf16 %v2915_v18  ;;  %v2066_v17 = vunpack.i.l.bf16 %v2915_v18 }
 0x250   : > { %1157 = vmatpush.bf16.msra.mxu1 %v1043_v61  ;;  %v877_v51 = vpop.permute.xlu1 %876  ;;  %v652_v61 = vmul.f32 %v2664_v60, %v2468_v2 }
 0x251   : > { %v881_v14 = vsel %vm857_vm3, %v2826_v31, %v877_v51  ;;  %v1225_v31 = vld [vmem:[%s3285_s6 + $0x8] sm:$0xff]  ;;  %v698_v11 = vsel %vm673_vm15, %v2066_v17, %v2067_v19  ;;  %vm1371_vm3 = vcmask 15360  }
 0x252   : > { %v893_v32 = vmul.f32 %v2681_v7, %v881_v14  ;;  %1235 = vperm.xlu1 %2088, %v1225_v31  }
 0x254   : > { %v1056_v44 = vpack.c.bf16 %v893_v32, %v2687_v15  ;;  %v1027_v15 = vmul.f32 %v2882_v59, %v1017_v10 }
 0x256   : > { %v781_v8 = vpop.permute.xlu0 %780  ;;  %1182 = vmatpush.bf16.msra.mxu0 %v1056_v44 }
 0x257   : > { %v789_v13 = vsel %vm767_vm2, %v2703_v33, %v781_v8 }
 0x258   : > { %v1012_v4 = vpop.permute.xlu1 %1011  ;;  %v799_v42 = vmul.f32 %v2664_v60, %v789_v13 }
 0x259   : > { %v1019_v5 = vsel %vm996_vm5, %v1012_v4, %v2896_v24 }
 0x25a   : > { %v1031_v9 = vmul.f32 %v2882_v59, %v1019_v5  ;;  %1183 = vmatpush.bf16.msra.mxu0 %v1052_v36  ;;  %v732_v59 = vpop.permute.xlu2 %731  ;;  %v1931_v36 = vld [vmem:[%s3284_s5 + $0x8] sm:$0xff] }
 0x25b   : > { %v740_v3 = vsel %vm718_vm6, %v2647_v50, %v732_v59 }
 0x25c   : > { %v1067_v16 = vpack.c.bf16 %v1031_v9, %v1027_v15 }
 0x25e   : > { %1173 = vmatpush.bf16.msra.mxu3 %v1067_v16  ;;  %v738_v30 = vpop.permute.xlu0 %737 }
 0x25f   : > { %v742_v46 = vsel %vm718_vm6, %v2885_v39, %v738_v30  ;;  %v750_v39 = vmul.f32 %v2681_v7, %v740_v3 }
 0x260   : > { %v2075_v1 = vpop.permute.xlu1 %2074  ;;  %v754_v53 = vmul.f32 %v2681_v7, %v742_v46 }
 0x261   : > { %v2077_v6 = vunpack.i.h.bf16 %v2075_v1  ;;  %v2076_v58 = vunpack.i.l.bf16 %v2075_v1  ;;  %1885 = vmatmul.msk.bf16.vlgmr.msra.gmra.mxu3 %vm1092_vm0, %v2824_v21 }
 0x262   : > { %v1016_v29 = vpop.permute.xlu2 %1015  ;;  %v1044_v45 = vpack.c.bf16 %v754_v53, %v750_v39 }
 0x263   : > { %v700_v12 = vsel %vm673_vm15, %v2076_v58, %v2077_v6 }
 0x264   : > { %v1039_v20 = vpack.c.bf16 %v700_v12, %v698_v11 }
 0x266   : > { %1158 = vmatpush.bf16.msra.mxu1 %v1039_v20  ;;  %v2085_v48 = vpop.permute.xlu0 %2084 }
 0x267   : > { %v2087_v43 = vunpack.i.h.bf16 %v2085_v48  ;;  %v2086_v27 = vunpack.i.l.bf16 %v2085_v48 }
 0x268   : > { %v787_v41 = vpop.permute.xlu1 %786 }
 0x269   : > { %v791_v22 = vsel %vm767_vm2, %v785_v49, %v787_v41  ;;  %v1020_v49 = vsel %vm996_vm5, %v2896_v24, %v1016_v29  ;;  %v699_v50 = vsel %vm673_vm15, %v2067_v19, %v2086_v27  ;;  %v701_v55 = vsel %vm673_vm15, %v2077_v6, %v2087_v43 }
 0x26a   : > { %v803_v52 = vmul.f32 %v2664_v60, %v791_v22  ;;  %1159 = vmatpush.bf16.msra.mxu1 %v1035_v40  ;;  %v1032_v37 = vmul.f32 %v2681_v7, %v1020_v49  ;;  %v1040_v18 = vpack.c.bf16 %v701_v55, %v699_v50  ;;  %v656_v24 = vmul.f32 %v2664_v60, %v2578_v25  ;;  %v1930_v60 = vld [vmem:[%s3284_s5] sm:$0xff] }
 0x26c   : > { %v1048_v33 = vpack.c.bf16 %v803_v52, %v799_v42 }
 0x26d   : > { %1160 = vmatmul.bf16.vlgmr.msra.gmra.mxu1 %v2822_v63 }
 0x26e   : > { %1184 = vmatpush.bf16.msra.mxu0 %v1048_v33  ;;  %v1231_v27 = vpop.permute.xlu0 %1230 }
 0x270   : > { %v1010_v23 = vpop.permute.xlu1 %1009 }
 0x271   : > { %v1018_v56 = vsel %vm996_vm5, %v2700_v26, %v1010_v23  ;;  %v1036_v26 = vpack.c.bf16 %v656_v24, %v652_v61 }
 0x272   : > { %v1028_v54 = vmul.f32 %v2681_v7, %v1018_v56  ;;  %1185 = vmatpush.bf16.msra.mxu0 %v1044_v45 }
 0x274   : > { %v1068_v0 = vpack.c.bf16 %v1032_v37, %v1028_v54 }
 0x276   : > { %1186 = vmatpush.bf16.msra.mxu0 %v1040_v18  ;;  %1201 = vmatpush.bf16.msra.mxu2 %v1068_v0 }
 0x279   : > { %1886 = vmatmul.msk.bf16.vlgmr.msra.gmra.mxu2 %vm1092_vm0, %v2824_v21 }
 0x27a   : > { %1187 = vmatpush.bf16.msra.mxu0 %v1036_v26 }
 0x27d   : > { %1188 = vmatmul.bf16.vlgmr.msra.gmra.mxu0 %v2822_v63  ;;  %v1081_v14 = vpop.permute.xlu2 %1080 }
 0x283   : > { %v1076_v51 = vpop.permute.xlu1 %1075 }
 0x285   : > { %v1241_v61 = vpop.permute.xlu2 %1240 }
 0x2a6   : > { %v1105_v7 = vpop.f32.mrf.mxu0  ;;  %v1119_v34 = vpop.f32.mrf.mxu1 }
 0x2a7   : > { %v1106_v47 = vadd.f32 %v1105_v7, %v1076_v51 }
 0x2a9   : > { %v1120_v32 = vadd.f32 %v1119_v34, %v1106_v47 }
 0x2aa   : > { %v1147_v63 = vpop.f32.mrf.mxu3 }
 0x2ab   : > { %v1208_v8 = vmax.f32 %v1120_v32, 0.0 }
 0x2ae   : > { %v1107_v44 = vpop.f32.mrf.mxu0  ;;  %v1121_v2 = vpop.f32.mrf.mxu1 }
 0x2af   : > { %v1108_v38 = vadd.f32 %v1107_v44, %v1081_v14 }
 0x2b1   : > { %v1122_v62 = vadd.f32 %v1121_v2, %v1108_v38 }
 0x2b2   : > { %v1149_v15 = vpop.f32.mrf.mxu3 }
 0x2b3   : > { %v1212_v10 = vmax.f32 %v1122_v62, 0.0 }
 0x2b5   : > { %v1220_v25 = vpack.c.bf16 %v1212_v10, %v1208_v8  ;;  %v1246_v8 = vpop.permute.xlu0 %1245 }
 0x2b7   : > { %1271 = vmatpush.bf16.msrb.mxu3 %v1220_v25 }
 0x2ba   : > { %1895 = vmatmul.msk.bf16.vlgmr.msrb.gmra.mxu3 %vm1092_vm0, %v1930_v60 }
 0x2c2   : > { %v1133_v21 = vpop.f32.mrf.mxu2 }
 0x2c3   : > { %v1134_v4 = vadd.f32 %v1133_v21, %v1076_v51 }
 0x2c4   : > { %v1236_v50 = vpop.permute.xlu1 %1235 }
 0x2c5   : > { %v1148_v31 = vadd.f32 %v1147_v63, %v1134_v4 }
 0x2c7   : > { %v1209_v16 = vmax.f32 %v1148_v31, 0.0 }
 0x2ca   : > { %v1135_v5 = vpop.f32.mrf.mxu2  ;;  %1896 = vmatmul.msk.bf16.gmra.mxu3 %vm1092_vm0, %v1931_v36 }
 0x2cb   : > { %v1136_v9 = vadd.f32 %v1135_v5, %v1081_v14 }
 0x2cd   : > { %v1150_v57 = vadd.f32 %v1149_v15, %v1136_v9 }
 0x2cf   : > { %v1213_v19 = vmax.f32 %v1150_v57, 0.0 }
 0x2d1   : > { %v1221_v17 = vpack.c.bf16 %v1213_v19, %v1209_v16 }
 0x2d3   : > { %1290 = vmatpush.bf16.msrb.mxu1 %v1221_v17 }
 0x2d6   : > { %1897 = vmatmul.msk.bf16.vlgmr.msrb.gmra.mxu1 %vm1092_vm0, %v1930_v60 }
 0x2e4   : > { %v1175_v1 = vpop.f32.mrf.mxu3 }
 0x2e6   : > { %1898 = vmatmul.msk.bf16.gmra.mxu1 %vm1092_vm0, %v1931_v36 }
 0x2ea   : > { %v1161_v30 = vpop.f32.mrf.mxu1 }
 0x2eb   : > { %v1162_v6 = vadd.f32 %v1161_v30, %v1076_v51 }
 0x2ec   : > { %v1177_v12 = vpop.f32.mrf.mxu3 }
 0x2ed   : > { %v1176_v59 = vadd.f32 %v1175_v1, %v1162_v6  ;;  %v2243_v6 = vmov 256.0  }
 0x2ee   : > { %2090 = vrcp.f32 %v2243_v6 }
 0x2ef   : > { %v1210_v28 = vmax.f32 %v1176_v59, 0.0 }
 0x2f2   : > { %v1163_v58 = vpop.f32.mrf.mxu1 }
 0x2f3   : > { %v1164_v11 = vadd.f32 %v1163_v58, %v1081_v14 }
 0x2f4   : > { %v2091_v58 = vpop.eup %2090 }
 0x2f5   : > { %v1178_v20 = vadd.f32 %v1177_v12, %v1164_v11  ;;  %v1353_v59 = vmul.f32 256.0, %v2091_v58  ;;  %vm1357_vm2 = vweird.f32 %v2091_v58 }
 0x2f7   : > { %v1214_v35 = vmax.f32 %v1178_v20, 0.0  ;;  %v1354_v11 = vsub.f32 1.0, %v1353_v59 }
 0x2f9   : > { %v1222_v13 = vpack.c.bf16 %v1214_v35, %v1210_v28  ;;  %v1355_v12 = vmul.f32 %v2091_v58, %v1354_v11 }
 0x2fa   : > { %v1189_v41 = vpop.f32.mrf.mxu0 }
 0x2fb   : > { %1309 = vmatpush.bf16.msrb.mxu2 %v1222_v13  ;;  %v1190_v46 = vadd.f32 %v1189_v41, %v1076_v51  ;;  %v1356_v28 = vadd.f32 %v2091_v58, %v1355_v12 }
 0x2fc   : > { %v1203_v40 = vpop.f32.mrf.mxu2 }
 0x2fd   : > { %v1204_v42 = vadd.f32 %v1203_v40, %v1190_v46  ;;  %v1358_v13 = vsel %vm1357_vm2, %v2091_v58, %v1356_v28  ;;  %v1364_v46 = vld [vmem:[%s3286_s7 + $0x8] sm:$0xff]  ;;  %v1385_v28 = vld [vmem:[%s3287_s8] sm:$0x1] }
 0x2fe   : > { %1899 = vmatmul.msk.bf16.vlgmr.msrb.gmra.mxu2 %vm1092_vm0, %v1930_v60 }
 0x2ff   : > { %v1211_v29 = vmax.f32 %v1204_v42, 0.0 }
 0x302   : > { %v1191_v22 = vpop.f32.mrf.mxu0 }
 0x303   : > { %v1192_v48 = vadd.f32 %v1191_v22, %v1081_v14 }
 0x304   : > { %v1205_v52 = vpop.f32.mrf.mxu2 }
 0x305   : > { %v1206_v3 = vadd.f32 %v1205_v52, %v1192_v48  ;;  %v1363_v52 = vld [vmem:[%s3286_s7] sm:$0xff] }
 0x307   : > { %v1215_v53 = vmax.f32 %v1206_v3, 0.0  ;;  %v1365_v3 = vld [vmem:[%s3286_s7 + $0x10] sm:$0xff] }
 0x309   : > { %v1223_v33 = vpack.c.bf16 %v1215_v53, %v1211_v29 }
 0x30b   : > { %1328 = vmatpush.bf16.msrb.mxu0 %v1223_v33  ;;  %1934 = vmatpush.bf16.msra.mxu3 %v1223_v33 }
 0x30e   : > { %1900 = vmatmul.msk.bf16.gmra.mxu2 %vm1092_vm0, %v1931_v36  ;;  %1901 = vmatmul.msk.bf16.vlgmr.msrb.gmra.mxu0 %vm1092_vm0, %v1930_v60 }
 0x30f   : > { %1902 = vmatmul.msk.bf16.vlgmr.msra.gmra.mxu3 %vm1092_vm0, %v1931_v36 }
 0x33d   : > { %v1273_v43 = vpop.f32.mrf.mxu3 }
 0x33e   : > { %v2987_v49 = vadd.f32 %v1273_v43, %v1231_v27 }
 0x345   : > { %v1275_v56 = vpop.f32.mrf.mxu3 }
 0x346   : > { %v2993_v37 = vadd.f32 %v1275_v56, %v1236_v50 }
 0x34d   : > { %v1278_v18 = vpop.f32.mrf.mxu3 }
 0x34e   : > { %v2999_v26 = vadd.f32 %v1278_v18, %v1241_v61 }
 0x353   : > { %v1292_v39 = vpop.f32.mrf.mxu1 }
 0x354   : > { %v2989_v23 = vadd.f32 %v1292_v39, %v1231_v27 }
 0x355   : > { %v1280_v14 = vpop.f32.mrf.mxu3 }
 0x356   : > { %v1340_v45 = vadd.f32 %v2989_v23, %v2987_v49  ;;  %v3013_v21 = vadd.f32 %v1280_v14, %v1246_v8 }
 0x358   : > { %1341 = vadd.xlane.f32.xlu1 %v1340_v45 }
 0x35b   : > { %v1294_v55 = vpop.f32.mrf.mxu1 }
 0x35c   : > { %v2995_v54 = vadd.f32 %v1294_v55, %v1236_v50 }
 0x35e   : > { %v1343_v0 = vadd.f32 %v2995_v54, %v2993_v37 }
 0x360   : > { %1344 = vadd.xlane.f32.xlu2 %v1343_v0 }
 0x363   : > { %v1297_v24 = vpop.f32.mrf.mxu1 }
 0x364   : > { %v3001_v51 = vadd.f32 %v1297_v24, %v1241_v61 }
 0x366   : > { %v1346_v7 = vadd.f32 %v3001_v51, %v2999_v26 }
 0x368   : > { %1347 = vadd.xlane.f32.xlu1 %v1346_v7 }
 0x36b   : > { %v1299_v62 = vpop.f32.mrf.mxu1 }
 0x36c   : > { %v3011_v25 = vadd.f32 %v1299_v62, %v1246_v8 }
 0x36e   : > { %v1349_v31 = vadd.f32 %v3011_v25, %v3013_v21 }
 0x381   : > { %v1311_v34 = vpop.f32.mrf.mxu2 }
 0x382   : > { %v3005_v44 = vadd.f32 %v1311_v34, %v1231_v27 }
 0x389   : > { %v1313_v47 = vpop.f32.mrf.mxu2 }
 0x38a   : > { %v3015_v4 = vadd.f32 %v1313_v47, %v1236_v50 }
 0x38b   : > { %v1330_v32 = vpop.f32.mrf.mxu0 }
 0x38c   : > { %v3007_v2 = vadd.f32 %v1330_v32, %v1231_v27  ;;  %v1366_v27 = vld [vmem:[%s3286_s7 + $0x18] sm:$0xff] }
 0x38e   : > { %v1545_v38 = vadd.f32 %v3007_v2, %v3005_v44 }
 0x390   : > { %1546 = vadd.xlane.f32.xlu0 %v1545_v38 }
 0x391   : > { %v1316_v10 = vpop.f32.mrf.mxu2 }
 0x392   : > { %v1335_v60 = vpop.f32.mrf.mxu3  ;;  %v3023_v9 = vadd.f32 %v1316_v10, %v1241_v61 }
 0x393   : > { %v1332_v63 = vpop.f32.mrf.mxu0  ;;  %v3025_v16 = vadd.f32 %v1335_v60, %v1241_v61 }
 0x394   : > { %v3017_v36 = vadd.f32 %v1332_v63, %v1236_v50 }
 0x395   : > { %v1551_v1 = vadd.f32 %v3025_v16, %v3023_v9 }
 0x396   : > { %v1548_v5 = vadd.f32 %v3017_v36, %v3015_v4 }
 0x398   : > { %1350 = vadd.xlane.f32.xlu0 %v1349_v31  ;;  %1549 = vadd.xlane.f32.xlu2 %v1548_v5 }
 0x399   : > { %v1318_v15 = vpop.f32.mrf.mxu2 }
 0x39a   : > { %v3027_v57 = vadd.f32 %v1318_v15, %v1246_v8  ;;  %v1337_v19 = vpop.f32.mrf.mxu3 }
 0x39b   : > { %v3029_v17 = vadd.f32 %v1337_v19, %v1246_v8 }
 0x39d   : > { %v1554_v30 = vadd.f32 %v3029_v17, %v3027_v57 }
 0x39f   : > { %1555 = vadd.xlane.f32.xlu1 %v1554_v30 }
 0x3a0   : > { %1552 = vadd.xlane.f32.xlu2 %v1551_v1 }
 0x3cb   : > { %v1342_v20 = vpop.xlane.xlu1 %1341 }
 0x3cc   : > { %v1359_v42 = vmul.f32 %v1358_v13, %v1342_v20 }
 0x3ce   : > { %v1367_v53 = vmul.f32 %v1363_v52, %v1359_v42  ;;  %v1390_v42 = vld [vmem:[%s3288_s9 + $0x10] sm:$0xff] }
 0x3d0   : > { %v1372_v56 = vsel %vm1371_vm3, %v1367_v53, 0.0 }
 0x3d3   : > { %v1345_v35 = vpop.xlane.xlu2 %1344 }
 0x3d4   : > { %v1360_v40 = vmul.f32 %v1358_v13, %v1345_v35 }
 0x3d6   : > { %v1368_v29 = vmul.f32 %v1364_v46, %v1360_v40 }
 0x3d8   : > { %v1373_v43 = vsel %vm1371_vm3, %v1368_v29, 0.0 }
 0x3d9   : > { %v1374_v18 = vadd.f32 %v1373_v43, %v1372_v56 }
 0x3db   : > { %v1348_v41 = vpop.xlane.xlu1 %1347 }
 0x3dc   : > { %v1361_v48 = vmul.f32 %v1358_v13, %v1348_v41 }
 0x3de   : > { %v1369_v33 = vmul.f32 %v1365_v3, %v1361_v48  ;;  %v1389_v48 = vld [vmem:[%s3288_s9 + $0x8] sm:$0xff] }
 0x3e0   : > { %v1375_v50 = vsel %vm1371_vm3, %v1369_v33, 0.0 }
 0x3e1   : > { %v1376_v7 = vadd.f32 %v1375_v50, %v1374_v18 }
 0x403   : > { %v1547_v22 = vpop.xlane.xlu0 %1546 }
 0x404   : > { %v1557_v61 = vmul.f32 %v1547_v22, %v1358_v13 }
 0x406   : > { %v1565_v32 = vmul.f32 %v1557_v61, %v1363_v52  ;;  %v1388_v52 = vld [vmem:[%s3288_s9] sm:$0xff] }
 0x408   : > { %v1569_v5 = vsel %vm1371_vm3, %v1565_v32, 0.0 }
 0x40b   : > { %v1351_v39 = vpop.xlane.xlu0 %1350  ;;  %v1550_v45 = vpop.xlane.xlu2 %1549 }
 0x40c   : > { %v1362_v55 = vmul.f32 %v1358_v13, %v1351_v39  ;;  %v1558_v0 = vmul.f32 %v1550_v45, %v1358_v13  ;;  %v1582_v39 = vld [vmem:[%s3287_s8] sm:$0x1] }
 0x40e   : > { %v1370_v24 = vmul.f32 %v1366_v27, %v1362_v55  ;;  %v1566_v47 = vmul.f32 %v1558_v0, %v1364_v46  ;;  %v1391_v0 = vld [vmem:[%s3288_s9 + $0x18] sm:$0xff] }
 0x410   : > { %v1377_v34 = vsel %vm1371_vm3, %v1370_v24, 0.0  ;;  %v1570_v60 = vsel %vm1371_vm3, %v1566_v47, 0.0 }
 0x411   : > { %v1378_v14 = vadd.f32 %v1377_v34, %v1376_v7  ;;  %v1571_v1 = vadd.f32 %v1570_v60, %v1569_v5  ;;  %v1409_v5 = vld [vmem:[%s3289_s10] sm:$0xff] }
 0x412   : > { %v1556_v38 = vpop.xlane.xlu1 %1555 }
 0x413   : > { %v1379_v62 = vrot.slane %v1378_v14, 4  ;;  %v1560_v8 = vmul.f32 %v1556_v38, %v1358_v13  ;;  %v1553_v10 = vpop.xlane.xlu2 %1552 }
 0x414   : > { %v1559_v63 = vmul.f32 %v1553_v10, %v1358_v13 }
 0x415   : > { %v1380_v31 = vadd.f32 %v1379_v62, %v1378_v14  ;;  %v1568_v15 = vmul.f32 %v1560_v8, %v1366_v27 }
 0x416   : > { %v1567_v19 = vmul.f32 %v1559_v63, %v1365_v3  ;;  %v1410_v63 = vld [vmem:[%s3289_s10 + $0x8] sm:$0xff] }
 0x417   : > { %v1381_v30 = vrot.slane %v1380_v31, 2  ;;  %v1574_v11 = vsel %vm1371_vm3, %v1568_v15, 0.0 }
 0x418   : > { %v1572_v6 = vsel %vm1371_vm3, %v1567_v19, 0.0 }
 0x419   : > { %v1382_v58 = vadd.f32 %v1381_v30, %v1380_v31  ;;  %v1573_v59 = vadd.f32 %v1572_v6, %v1571_v1  ;;  %v1411_v31 = vld [vmem:[%s3289_s10 + $0x10] sm:$0xff] }
 0x41b   : > { %v1383_v12 = vrot.slane %v1382_v58, 1  ;;  %v1575_v20 = vadd.f32 %v1574_v11, %v1573_v59 }
 0x41d   : > { %v1384_v35 = vadd.f32 %v1383_v12, %v1382_v58  ;;  %v1576_v13 = vrot.slane %v1575_v20, 4 }
 0x41f   : > { %v1577_v41 = vadd.f32 %v1576_v13, %v1575_v20  ;;  %v1386_v40 = vadd.f32 %v1385_v28, %v1384_v35  ;;  %v1412_v13 = vld [vmem:[%s3289_s10 + $0x18] sm:$0xff] }
 0x421   : > { %v1578_v46 = vrot.slane %v1577_v41, 2  ;;  %v1387_v22 = vmax.f32 %v1386_v40, 0.0 }
 0x423   : > { %v1579_v3 = vadd.f32 %v1578_v46, %v1577_v41  ;;  %v1392_v29 = vperm.slane %v1387_v22, 0 }
 0x425   : > { %v1580_v53 = vrot.slane %v1579_v3, 1  ;;  %v1395_v33 = vmul.f32 %v1392_v29, %v1390_v42  ;;  %v1394_v43 = vmul.f32 %v1392_v29, %v1389_v48  ;;  %v1393_v27 = vmul.f32 %v1392_v29, %v1388_v52 }
 0x426   : > { %v1396_v24 = vmul.f32 %v1392_v29, %v1391_v0 }
 0x427   : > { %v1403_v45 = vsel %vm1371_vm3, %v1395_v33, 0.0  ;;  %v1400_v56 = vsel %vm1371_vm3, %v1394_v43, 0.0  ;;  %v1397_v50 = vsel %vm1371_vm3, %v1393_v27, 0.0  ;;  %v1581_v55 = vadd.f32 %v1580_v53, %v1579_v3 }
 0x428   : > { %1404 = vadd.xlane.f32.xlu1 %v1403_v45  ;;  %1401 = vadd.xlane.f32.xlu0 %v1400_v56  ;;  %v1406_v14 = vsel %vm1371_vm3, %v1396_v24, 0.0 }
 0x429   : > { %1398 = vadd.xlane.f32.xlu2 %v1397_v50  ;;  %v1583_v18 = vadd.f32 %v1582_v39, %v1581_v55 }
 0x42b   : > { %v1584_v61 = vmax.f32 %v1583_v18, 0.0 }
 0x42d   : > { %v1589_v7 = vperm.slane %v1584_v61, 0 }
 0x42f   : > { %v1591_v34 = vmul.f32 %v1589_v7, %v1389_v48  ;;  %v1590_v47 = vmul.f32 %v1589_v7, %v1388_v52  ;;  %v1592_v62 = vmul.f32 %v1589_v7, %v1390_v42  ;;  %v1593_v8 = vmul.f32 %v1589_v7, %v1391_v0 }
 0x431   : > { %1407 = vadd.xlane.f32.xlu2 %v1406_v14  ;;  %v1597_v32 = vsel %vm1371_vm3, %v1591_v34, 0.0  ;;  %v1594_v38 = vsel %vm1371_vm3, %v1590_v47, 0.0  ;;  %v1600_v10 = vsel %vm1371_vm3, %v1592_v62, 0.0  ;;  %v1603_v60 = vsel %vm1371_vm3, %v1593_v8, 0.0 }
 0x432   : > { %1598 = vadd.xlane.f32.xlu1 %v1597_v32  ;;  %1595 = vadd.xlane.f32.xlu0 %v1594_v38 }
 0x439   : > { %1601 = vadd.xlane.f32.xlu2 %v1600_v10 }
 0x43a   : > { %1604 = vadd.xlane.f32.xlu0 %v1603_v60 }
 0x49b   : > { %v1402_v15 = vpop.xlane.xlu0 %1401  ;;  %v1405_v19 = vpop.xlane.xlu1 %1404 }
 0x49c   : > { %v1414_v30 = vadd.f32 %v1410_v63, %v1402_v15  ;;  %v1399_v1 = vpop.xlane.xlu2 %1398  ;;  %v1415_v6 = vadd.f32 %v1411_v31, %v1405_v19 }
 0x49d   : > { %v1413_v58 = vadd.f32 %v1409_v5, %v1399_v1 }
 0x49e   : > { %v1418_v59 = vsub.f32 0.0, %v1414_v30  ;;  %v1419_v11 = vsub.f32 0.0, %v1415_v6 }
 0x49f   : > { %v1417_v12 = vsub.f32 0.0, %v1413_v58 }
 0x4a0   : > { %v1423_v20 = vmul.f32 1.442695, %v1418_v59  ;;  %v1425_v28 = vmul.f32 1.442695, %v1419_v11 }
 0x4a1   : > { %v1421_v35 = vmul.f32 1.442695, %v1417_v12 }
 0x4a2   : > { %2092 = vpow2.f32 %v1423_v20 }
 0x4a3   : > { %2094 = vpow2.f32 %v1421_v35 }
 0x4a4   : > { %2096 = vpow2.f32 %v1425_v28  ;;  %v1408_v41 = vpop.xlane.xlu2 %1407 }
 0x4a5   : > { %v1416_v40 = vadd.f32 %v1412_v13, %v1408_v41  ;;  %v1596_v46 = vpop.xlane.xlu0 %1595  ;;  %v1599_v22 = vpop.xlane.xlu1 %1598 }
 0x4a6   : > { %v1610_v42 = vadd.f32 %v1596_v46, %v1409_v5  ;;  %v1611_v48 = vadd.f32 %v1599_v22, %v1410_v63 }
 0x4a7   : > { %v1420_v52 = vsub.f32 0.0, %v1416_v40 }
 0x4a8   : > { %v2093_v3 = vpop.eup %2092  ;;  %v1614_v29 = vsub.f32 0.0, %v1610_v42  ;;  %v1615_v53 = vsub.f32 0.0, %v1611_v48 }
 0x4a9   : > { %v2095_v33 = vpop.eup %2094  ;;  %v1430_v43 = vadd.f32 1.0, %v2093_v3  ;;  %v1427_v45 = vmul.f32 1.442695, %v1420_v52 }
 0x4aa   : > { %v2097_v27 = vpop.eup %2096  ;;  %v3093_v39 = vadd.f32 1.0, %v2095_v33  ;;  %v1618_v50 = vmul.f32 1.442695, %v1614_v29  ;;  %v1620_v55 = vmul.f32 1.442695, %v1615_v53 }
 0x4ab   : > { %2098 = vrcp.f32 %v1430_v43  ;;  %v3095_v56 = vadd.f32 1.0, %v2097_v27  ;;  %v1457_v7 = vand.u32 2147483647, %v1430_v43  ;;  %v1459_v47 = vand.u32 2147483648, %v1430_v43 }
 0x4ac   : > { %2100 = vrcp.f32 %v3093_v39  ;;  %v1602_v0 = vpop.xlane.xlu2 %1601  ;;  %v1442_v14 = vand.u32 2147483647, %v3093_v39  ;;  %v1444_v38 = vand.u32 2147483648, %v3093_v39  ;;  %vm1453_vm4 = vweird.f32 %v1430_v43 }
 0x4ad   : > { %2102 = vrcp.f32 %v3095_v56  ;;  %v1612_v18 = vadd.f32 %v1602_v0, %v1411_v31  ;;  %v1605_v61 = vpop.xlane.xlu0 %1604  ;;  %vm3101_vm5 = vcmp.eq.f32.partialorder %v1457_v7, 8.507059e+37  ;;  %vm1438_vm6 = vweird.f32 %v3093_v39 }
 0x4ae   : > { %2104 = vpow2.f32 %v1427_v45  ;;  %v1613_v24 = vadd.f32 %v1605_v61, %v1412_v13  ;;  %v1460_v15 = vor.u32 1.1754944e-38, %v1459_v47  ;;  %vm3107_vm8 = vcmp.eq.f32.partialorder %v1442_v14, 8.507059e+37 }
 0x4af   : > { %2106 = vpow2.f32 %v1618_v50  ;;  %v1616_v34 = vsub.f32 0.0, %v1612_v18  ;;  %v1445_v58 = vor.u32 1.1754944e-38, %v1444_v38  ;;  %v1472_v28 = vand.u32 2147483647, %v3095_v56 }
 0x4b0   : > { %2108 = vpow2.f32 %v1620_v55  ;;  %v1617_v32 = vsub.f32 0.0, %v1613_v24  ;;  %v1474_v35 = vand.u32 2147483648, %v3095_v56  ;;  %vm1468_vm13 = vweird.f32 %v3095_v56 }
 0x4b1   : > { %v2099_v62 = vpop.eup %2098  ;;  %v1622_v8 = vmul.f32 1.442695, %v1616_v34  ;;  %vm3125_vm14 = vcmp.eq.f32.partialorder %v1472_v28, 8.507059e+37 }
 0x4b2   : > { %v2101_v10 = vpop.eup %2100  ;;  %v1624_v60 = vmul.f32 1.442695, %v1617_v32  ;;  %v1449_v63 = vmul.f32 %v2099_v62, %v1430_v43  ;;  %vm1454_vm9 = vweird.f32 %v2099_v62  ;;  %v1475_v55 = vor.u32 1.1754944e-38, %v1474_v35 }
 0x4b3   : > { %v2103_v5 = vpop.eup %2102  ;;  %2110 = vpow2.f32 %v1622_v8  ;;  %v1434_v19 = vmul.f32 %v2101_v10, %v3093_v39  ;;  %vm1439_vm10 = vweird.f32 %v2101_v10  ;;  %vm1455_vm12 = vmor %vm1453_vm4, %vm1454_vm9  ;;  %v2124_v8 = vld [vmem:[%s2398_s13 + $0x10] sm:$0xff] }
 0x4b4   : > { %v2105_v1 = vpop.eup %2104  ;;  %2112 = vpow2.f32 %v1624_v60  ;;  %v1450_v6 = vsub.f32 1.0, %v1449_v63  ;;  %v1464_v59 = vmul.f32 %v2103_v5, %v3095_v56  ;;  %vm1469_vm11 = vweird.f32 %v2103_v5  ;;  %vm1440_vm15 = vmor %vm1438_vm6, %vm1439_vm10 }
 0x4b5   : > { %v2107_v11 = vpop.eup %2106  ;;  %v3112_v12 = vadd.f32 1.0, %v2105_v1  ;;  %v1435_v20 = vsub.f32 1.0, %v1434_v19  ;;  %vm1470_vm0 = vmor %vm1468_vm13, %vm1469_vm11 }
 0x4b6   : > { %v2109_v13 = vpop.eup %2108  ;;  %v3116_v41 = vadd.f32 1.0, %v2107_v11  ;;  %v1451_v40 = vmul.f32 %v2099_v62, %v1450_v6  ;;  %v1465_v46 = vsub.f32 1.0, %v1464_v59 }
 0x4b7   : > { %2114 = vrcp.f32 %v3112_v12  ;;  %v3119_v22 = vadd.f32 1.0, %v2109_v13  ;;  %v1436_v42 = vmul.f32 %v2101_v10, %v1435_v20  ;;  %v1487_v56 = vand.u32 2147483647, %v3112_v12 }
 0x4b8   : > { %2116 = vrcp.f32 %v3116_v41  ;;  %v1452_v48 = vadd.f32 %v2099_v62, %v1451_v40  ;;  %v1466_v52 = vmul.f32 %v2103_v5, %v1465_v46  ;;  %v1489_v24 = vand.u32 2147483648, %v3112_v12 }
 0x4b9   : > { %v2111_v3 = vpop.eup %2110  ;;  %2118 = vrcp.f32 %v3119_v22  ;;  %v1437_v29 = vadd.f32 %v2101_v10, %v1436_v42  ;;  %v1639_v47 = vand.u32 2147483647, %v3116_v41  ;;  %vm1483_vm1 = vweird.f32 %v3112_v12 }
 0x4ba   : > { %v2113_v33 = vpop.eup %2112  ;;  %v3129_v27 = vadd.f32 1.0, %v2111_v3  ;;  %v1456_v45 = vsel %vm1455_vm12, %v2099_v62, %v1452_v48  ;;  %v1467_v50 = vadd.f32 %v2103_v5, %v1466_v52  ;;  %v1641_v38 = vand.u32 2147483648, %v3116_v41 }
 0x4bb   : > { %v3133_v0 = vadd.f32 1.0, %v2113_v33  ;;  %v1461_v43 = vsel %vm3101_vm5, %v1460_v15, %v1456_v45  ;;  %v1441_v18 = vsel %vm1440_vm15, %v2101_v10, %v1437_v29  ;;  %vm3150_vm7 = vcmp.eq.f32.partialorder %v1487_v56, 8.507059e+37 }
 0x4bc   : > { %2120 = vrcp.f32 %v3129_v27  ;;  %1500 = vperm.xlu2 %2089, %v1461_v43   ;;  %v1446_v61 = vsel %vm3107_vm8, %v1445_v58, %v1441_v18  ;;  %v1471_v39 = vsel %vm1470_vm0, %v2103_v5, %v1467_v50  ;;  %vm1635_vm2 = vweird.f32 %v3116_v41 }
 0x4bd   : > { %v2115_v7 = vpop.eup %2114  ;;  %2122 = vrcp.f32 %v3133_v0  ;;  %1495 = vperm.xlu1 %2088, %v1446_v61   ;;  %v1476_v34 = vsel %vm3125_vm14, %v1475_v55, %v1471_v39  ;;  %v1654_v60 = vand.u32 2147483647, %v3119_v22  ;;  %v1490_v31 = vor.u32 1.1754944e-38, %v1489_v24 }
 0x4be   : > { %v2117_v14 = vpop.eup %2116  ;;  %1505 = vperm.xlu0 %1997, %v1476_v34   ;;  %v1479_v32 = vmul.f32 %v2115_v7, %v3112_v12  ;;  %v1656_v15 = vand.u32 2147483648, %v3119_v22  ;;  %vm1484_vm3 = vweird.f32 %v2115_v7  ;;  %vm3159_vm4 = vcmp.eq.f32.partialorder %v1639_v47, 8.507059e+37 }
 0x4bf   : > { %v2119_v62 = vpop.eup %2118  ;;  %v1631_v10 = vmul.f32 %v2117_v14, %v3116_v41  ;;  %vm1650_vm5 = vweird.f32 %v3119_v22  ;;  %vm1636_vm6 = vweird.f32 %v2117_v14  ;;  %v1642_v58 = vor.u32 1.1754944e-38, %v1641_v38  ;;  %vm1485_vm10 = vmor %vm1483_vm1, %vm1484_vm3 }
 0x4c0   : > { %v1480_v63 = vsub.f32 1.0, %v1479_v32  ;;  %v1646_v5 = vmul.f32 %v2119_v62, %v3119_v22  ;;  %vm1651_vm8 = vweird.f32 %v2119_v62  ;;  %vm3164_vm9 = vcmp.eq.f32.partialorder %v1654_v60, 8.507059e+37  ;;  %vm1637_vm11 = vmor %vm1635_vm2, %vm1636_vm6  ;;  %v2125_v60 = vld [vmem:[%s2398_s13 + $0x18] sm:$0xff] }
 0x4c1   : > { %v1632_v19 = vsub.f32 1.0, %v1631_v10  ;;  %v1657_v46 = vor.u32 1.1754944e-38, %v1656_v15  ;;  %v1669_v3 = vand.u32 2147483647, %v3129_v27  ;;  %v1671_v29 = vand.u32 2147483648, %v3129_v27  ;;  %vm1652_vm13 = vmor %vm1650_vm5, %vm1651_vm8  ;;  %v1905_v15 = vld [vmem:[%s2398_s13 + $0x50] sm:$0xff] }
 0x4c2   : > { %v2121_v1 = vpop.eup %2120  ;;  %v1481_v6 = vmul.f32 %v2115_v7, %v1480_v63  ;;  %v1647_v59 = vsub.f32 1.0, %v1646_v5  ;;  %v1686_v56 = vand.u32 2147483648, %v3133_v0  ;;  %vm1665_vm15 = vweird.f32 %v3129_v27 }
 0x4c3   : > { %v2123_v11 = vpop.eup %2122  ;;  %v1633_v20 = vmul.f32 %v2117_v14, %v1632_v19  ;;  %v1661_v35 = vmul.f32 %v2121_v1, %v3129_v27  ;;  %vm1666_vm12 = vweird.f32 %v2121_v1  ;;  %v1684_v22 = vand.u32 2147483647, %v3133_v0  ;;  %v1906_v19 = vld [vmem:[%s2398_s13 + $0x58] sm:$0xff] }
 0x4c4   : > { %v1482_v13 = vadd.f32 %v2115_v7, %v1481_v6  ;;  %v1648_v40 = vmul.f32 %v2119_v62, %v1647_v59  ;;  %v1676_v42 = vmul.f32 %v2123_v11, %v3133_v0  ;;  %vm1681_vm14 = vweird.f32 %v2123_v11  ;;  %vm1667_vm0 = vmor %vm1665_vm15, %vm1666_vm12 }
 0x4c5   : > { %v1634_v48 = vadd.f32 %v2117_v14, %v1633_v20  ;;  %v1662_v52 = vsub.f32 1.0, %v1661_v35  ;;  %vm1680_vm1 = vweird.f32 %v3133_v0  ;;  %v1672_v34 = vor.u32 1.1754944e-38, %v1671_v29 }
 0x4c6   : > { %v1486_v53 = vsel %vm1485_vm10, %v2115_v7, %v1482_v13  ;;  %v1649_v33 = vadd.f32 %v2119_v62, %v1648_v40  ;;  %v1677_v45 = vsub.f32 1.0, %v1676_v42  ;;  %vm1670_vm2 = vcmp.eq.f32.partialorder %v1669_v3, 8.507059e+37  ;;  %v2126_v13 = vld [vmem:[%s2398_s13] sm:$0xff]  ;;  %v2129_v3 = vld [vmem:[%s2398_s13 + $0x28] sm:$0xff] }
 0x4c7   : > { %v1491_v50 = vsel %vm3150_vm7, %v1490_v31, %v1486_v53  ;;  %v1638_v55 = vsel %vm1637_vm11, %v2117_v14, %v1634_v48  ;;  %v1663_v12 = vmul.f32 %v2121_v1, %v1662_v52  ;;  %vm1682_vm7 = vmor %vm1680_vm1, %vm1681_vm14  ;;  %v1687_v14 = vor.u32 1.1754944e-38, %v1686_v56  ;;  %v2128_v48 = vld [vmem:[%s2398_s13 + $0x20] sm:$0xff] }
 0x4c8   : > { %1510 = vperm.xlu1 %2088, %v1491_v50   ;;  %v1643_v43 = vsel %vm3159_vm4, %v1642_v58, %v1638_v55  ;;  %v1653_v18 = vsel %vm1652_vm13, %v2119_v62, %v1649_v33  ;;  %v1678_v41 = vmul.f32 %v2123_v11, %v1677_v45  ;;  %vm1685_vm3 = vcmp.eq.f32.partialorder %v1684_v22, 8.507059e+37  ;;  %v1903_v50 = vld [vmem:[%s2398_s13 + $0x40] sm:$0xff]  ;;  %v1904_v55 = vld [vmem:[%s2398_s13 + $0x48] sm:$0xff] }
 0x4c9   : > { %1692 = vperm.xlu0 %1997, %v1643_v43   ;;  %v1658_v61 = vsel %vm3164_vm9, %v1657_v46, %v1653_v18  ;;  %v1664_v39 = vadd.f32 %v2121_v1, %v1663_v12  ;;  %v2127_v46 = vld [vmem:[%s2398_s13 + $0x8] sm:$0xff] }
 0x4ca   : > { %1697 = vperm.xlu2 %2089, %v1658_v61   ;;  %v1679_v24 = vadd.f32 %v2123_v11, %v1678_v41  ;;  %v2130_v41 = vld [vmem:[%s2398_s13 + $0x30] sm:$0xff]  ;;  %v2131_v61 = vld [vmem:[%s2398_s13 + $0x38] sm:$0xff] }
 0x4cb   : > { %v1668_v7 = vsel %vm1667_vm0, %v2121_v1, %v1664_v39 }
 0x4cc   : > { %v1683_v47 = vsel %vm1682_vm7, %v2123_v11, %v1679_v24  ;;  %v1673_v32 = vsel %vm1670_vm2, %v1672_v34, %v1668_v7 }
 0x4cd   : > { %v1688_v27 = vsel %vm1685_vm3, %v1687_v14, %v1683_v47  ;;  %v1908_v47 = vld [vmem:[%s2398_s13 + $0x68] sm:$0xff] }
 0x4d0   : > { %1702 = vperm.xlu1 %2088, %v1673_v32  }
 0x4d1   : > { %1707 = vperm.xlu0 %1997, %v1688_v27   ;;  %v1909_v27 = vld [vmem:[%s2398_s13 + $0x70] sm:$0xff] }
 0x516   : > { %v1501_v38 = vpop.permute.xlu2 %1500 }
 0x517   : > { %v1515_v62 = vmul.f32 %v1501_v38, %v2993_v37  ;;  %v1516_v0 = vmul.f32 %v1501_v38, %v2995_v54  ;;  %v1910_v38 = vld [vmem:[%s2398_s13 + $0x78] sm:$0xff] }
 0x519   : > { %v1523_v10 = vadd.f32 %v2124_v8, %v1515_v62  ;;  %v1524_v63 = vadd.f32 %v2125_v60, %v1516_v0 }
 0x51b   : > { %v1531_v31 = vmax.f32 %v1523_v10, 0.0  ;;  %v1532_v5 = vmax.f32 %v1524_v63, 0.0 }
 0x51d   : > { %1539 = vst [vmem:[%s3199_s15 + $0x10] sm:$0xff] %v1531_v31 }
 0x51e   : > { %1540 = vst [vmem:[%s3199_s15 + $0x18] sm:$0xff] %v1532_v5 }
 0x524   : > { %v1698_v37 = vpop.permute.xlu2 %1697 }
 0x525   : > { %v1712_v54 = vmul.f32 %v1698_v37, %v3015_v4  ;;  %v1713_v30 = vmul.f32 %v1698_v37, %v3017_v36 }
 0x527   : > { %v1728_v1 = vadd.f32 %v1905_v15, %v1712_v54  ;;  %v1729_v6 = vadd.f32 %v1906_v19, %v1713_v30 }
 0x529   : > { %v1736_v58 = vmax.f32 %v1728_v1, 0.0  ;;  %v1737_v59 = vmax.f32 %v1729_v6, 0.0 }
 0x52b   : > { %1913 = vst [vmem:[%s3199_s15 + $0x50] sm:$0xff] %v1736_v58 }
 0x52c   : > { %1914 = vst [vmem:[%s3199_s15 + $0x58] sm:$0xff] %v1737_v59 }
 0x52f   : > { %v1496_v11 = vpop.permute.xlu1 %1495 }
 0x530   : > { %v1506_v20 = vpop.permute.xlu0 %1505  ;;  %v1513_v28 = vmul.f32 %v1496_v11, %v2987_v49  ;;  %v1514_v35 = vmul.f32 %v1496_v11, %v2989_v23 }
 0x531   : > { %v1517_v4 = vmul.f32 %v1506_v20, %v2999_v26  ;;  %v1518_v36 = vmul.f32 %v1506_v20, %v3001_v51 }
 0x532   : > { %v1521_v40 = vadd.f32 %v2126_v13, %v1513_v28  ;;  %v1522_v42 = vadd.f32 %v2127_v46, %v1514_v35 }
 0x533   : > { %v1525_v52 = vadd.f32 %v2128_v48, %v1517_v4  ;;  %v1526_v49 = vadd.f32 %v2129_v3, %v1518_v36 }
 0x534   : > { %v1529_v29 = vmax.f32 %v1521_v40, 0.0  ;;  %v1530_v26 = vmax.f32 %v1522_v42, 0.0 }
 0x535   : > { %v1533_v23 = vmax.f32 %v1525_v52, 0.0  ;;  %v1534_v53 = vmax.f32 %v1526_v49, 0.0 }
 0x536   : > { %1537 = vst [vmem:[%s3199_s15] sm:$0xff] %v1529_v29 }
 0x537   : > { %1541 = vst [vmem:[%s3199_s15 + $0x20] sm:$0xff] %v1533_v23 }
 0x538   : > { %1542 = vst [vmem:[%s3199_s15 + $0x28] sm:$0xff] %v1534_v53 }
 0x539   : > { %1538 = vst [vmem:[%s3199_s15 + $0x8] sm:$0xff] %v1530_v26 }
 0x53a   : > { %v1511_v51 = vpop.permute.xlu1 %1510 }
 0x53b   : > { %v1519_v33 = vmul.f32 %v1511_v51, %v3013_v21  ;;  %v1520_v45 = vmul.f32 %v1511_v51, %v3011_v25  ;;  %v1693_v12 = vpop.permute.xlu0 %1692 }
 0x53c   : > { %v1710_v43 = vmul.f32 %v1693_v12, %v3005_v44  ;;  %v1711_v18 = vmul.f32 %v1693_v12, %v3007_v2  ;;  %v1907_v44 = vld [vmem:[%s2398_s13 + $0x60] sm:$0xff]  ;;  %s1767_s13 = sshll.u32 %s1764_s24, 4  ;;  %s1768_s13 = int_to_ptr.hbm [resolvable:$true] %s1767_s13 }
 0x53d   : > { %v1527_v56 = vadd.f32 %v2130_v41, %v1519_v33  ;;  %v1528_v39 = vadd.f32 %v2131_v61, %v1520_v45  ;;  %s2176_s19 = sshra.s32 %s1768_s13, 4  ;;  %s2177_s19 = int_to_ptr.hbm [resolvable:$true] %s2176_s19 }
 0x53e   : > { %v1726_v21 = vadd.f32 %v1903_v50, %v1710_v43  ;;  %v1727_v25 = vadd.f32 %v1904_v55, %v1711_v18  ;;  %s2178_s23 = scalar_lea.hbm %s2177_s19, 128  ;;  %p2183_p0 = scmp.lt.s32.totalorder %s2177_s19, %s3290_s11 }
 0x53f   : > { %v1535_v22 = vmax.f32 %v1527_v56, 0.0  ;;  %v1536_v24 = vmax.f32 %v1528_v39, 0.0  ;;  %p2179_p6 = scmp.ne.s32.totalorder %s2177_s19, %s2178_s23  ;;  %p2184_p1 = scmp.lt.s32.totalorder %s2182_s25, %s2178_s23 }
 0x540   : > { %v1734_v7 = vmax.f32 %v1726_v21, 0.0  ;;  %v1735_v34 = vmax.f32 %v1727_v25, 0.0 }
 0x541   : > { %1543 = vst [vmem:[%s3199_s15 + $0x30] sm:$0xff] %v1535_v22  ;;  %p2180_p9 = pnand %p2179_p6, %p2356_p11  ;;  %p2185_p3 = por %p2184_p1, %p2183_p0 }
 0x542   : > { %1544 = vst [vmem:[%s3199_s15 + $0x38] sm:$0xff] %v1536_v24  ;;  %v1703_v2 = vpop.permute.xlu1 %1702 }
 0x543   : > { %1911 = vst [vmem:[%s3199_s15 + $0x40] sm:$0xff] %v1734_v7  ;;  %v1714_v14 = vmul.f32 %v1703_v2, %v3023_v9  ;;  %v1715_v32 = vmul.f32 %v1703_v2, %v3025_v16  ;;  %v1708_v62 = vpop.permute.xlu0 %1707  ;;  %p2181_p13 = pneg %p2180_p9 }
 0x544   : > { %1912 = vst [vmem:[%s3199_s15 + $0x48] sm:$0xff] %v1735_v34  ;;  %v1716_v0 = vmul.f32 %v1708_v62, %v3027_v57  ;;  %v1717_v8 = vmul.f32 %v1708_v62, %v3029_v17 }
 0x545   : > { %v1730_v10 = vadd.f32 %v1907_v44, %v1714_v14  ;;  %v1731_v9 = vadd.f32 %v1908_v47, %v1715_v32  ;;  %p2186_p4 = pnand %p2185_p3, %p2181_p13 }
 0x546   : > { %v1732_v16 = vadd.f32 %v1909_v27, %v1716_v0  ;;  %v1733_v60 = vadd.f32 %v1910_v38, %v1717_v8 }
 0x547   : > { %v1738_v63 = vmax.f32 %v1730_v10, 0.0  ;;  %v1739_v31 = vmax.f32 %v1731_v9, 0.0 }
 0x548   : > { %v1740_v5 = vmax.f32 %v1732_v16, 0.0  ;;  %v1741_v15 = vmax.f32 %v1733_v60, 0.0 }
 0x549   : > { %1915 = vst [vmem:[%s3199_s15 + $0x60] sm:$0xff] %v1738_v63 }
 0x54a   : > { %1916 = vst [vmem:[%s3199_s15 + $0x68] sm:$0xff] %v1739_v31 }
 0x54b   : > { %1917 = vst [vmem:[%s3199_s15 + $0x70] sm:$0xff] %v1740_v5 }
 0x54c   : > { %1918 = vst [vmem:[%s3199_s15 + $0x78] sm:$0xff] %v1741_v15 }
 0x54d   : > { %2189 = shalt.err (!%p2186_p4)
}
 0x54e   : > { %s2244_s22 = smov 256   ;;  %s2245_s15 = smov 16  }
 0x54f   : > { %1937 = dma.vmem_to_hbm [thread:$0]  (%p2356_p11), %s1766_s21, 2048, %s1768_s13, %s1752_s30, %s2244_s22, %s2244_s22, %s2245_s15  }
 0x550 PF: > { %s3318_s17 = sld [smem:[#allocation8_spill]]  ;;  %p3320_p7 = scmp.ge.s32.totalorder %s2228_s20, 2 }
 0x552   : > { %p1944_p5 = pnand %p3320_p7, %p2360_p12 }
 0x554   : > { %p1945_p8 = pneg %p1944_p5 }
 0x556   : > { %s1782_s12 = sand.u32 1, %s3318_s17  }
 0x557   : > { %s1783_s24 = scalar_lea.sflag [#allocation4], %s1782_s12 }
 0x558   : > { %2211 = dma.done.wait (%p1945_p8), %s1783_s24, 2048  }
 0x559   : > { %2213 = vsyncadd (%p1945_p8), %s1783_s24, 4294965248  ;;  %s3321_s20 = sld [smem:[#allocation10_spill]]  ;;  %s3324_s17 = smov %s2220_s18 }
 0x55a   : > { %s3322_s19 = sld [smem:[#allocation9_spill]] }
 0x55b   : > { %s3323_s23 = sld [smem:[#allocation11_spill]] }
 0x55f   : > { %p24_p10 = scmp.ge.s32.totalorder %s3321_s20, 4  }
 0x560   : > { %s3325_s18 = smov %s3322_s19 }
 0x561   : > { %s3326_s19 = smov %s3323_s23  ;;  %26 = sbr.rel (!%p24_p10) target bundleno = 5 (0x5), region = 111 }
 0x566   :  { %1789 = vsyncpa [#allocation3], 1 }
 0x567   :  { %1791 = vsyncpa [#allocation3 + $0x1], 1 }
 0x568   :  { %1792 = vsyncpa [#allocation4], 1 }
 0x569   :  { %1794 = vsyncpa [#allocation4 + $0x1], 1 }

</bundles_post_ra>
